<compile_context>
chip_gen: v5e
topology: v5e:2x2
jax: 0.10.0
libtpu: 0.0.40
codegen_flags: <defaults>
</compile_context>

<pallas_src>
import functools

import numpy as np
import jax
import jax.numpy as jnp
from jax import lax
from jax.experimental import pallas as pl
from jax.experimental.pallas import tpu as pltpu


# ----------------------------------------------------------------------------
# Base ("cell") anchor generation — numpy glue, mirrors the torch reference.
# ----------------------------------------------------------------------------
def _mkanchors(ws, hs, x_ctr, y_ctr):
    ws = ws[:, np.newaxis]
    hs = hs[:, np.newaxis]
    return np.hstack((x_ctr - 0.5 * (ws - 1), y_ctr - 0.5 * (hs - 1),
                      x_ctr + 0.5 * (ws - 1), y_ctr + 0.5 * (hs - 1)))


def _whctrs(anchor):
    w = anchor[2] - anchor[0] + 1
    h = anchor[3] - anchor[1] + 1
    x_ctr = anchor[0] + 0.5 * (w - 1)
    y_ctr = anchor[1] + 0.5 * (h - 1)
    return w, h, x_ctr, y_ctr


def _ratio_enum(anchor, ratios):
    w, h, x_ctr, y_ctr = _whctrs(anchor)
    size = w * h
    size_ratios = size / ratios
    ws = np.round(np.sqrt(size_ratios))
    hs = np.round(ws * ratios)
    return _mkanchors(ws, hs, x_ctr, y_ctr)


def _scale_enum(anchor, scales):
    w, h, x_ctr, y_ctr = _whctrs(anchor)
    return _mkanchors(w * scales, h * scales, x_ctr, y_ctr)


def generate_anchors(stride=16, sizes=(32, 64, 128, 256, 512),
                     aspect_ratios=(0.5, 1, 2)):
    scales = np.array(sizes, dtype=np.float64) / stride
    ratios = np.array(aspect_ratios, dtype=np.float64)
    anchor = np.array([1, 1, stride, stride], dtype=np.float64) - 0.5
    anchors = _ratio_enum(anchor, ratios)
    anchors = np.vstack(
        [_scale_enum(anchors[i, :], scales) for i in range(anchors.shape[0])])
    return anchors.astype(np.float32)


# ----------------------------------------------------------------------------
# Pallas kernels
# ----------------------------------------------------------------------------
def _bbox_kernel(xbase_ref, ymask_ref, bbox_ref, *, stride):
    """bbox_ref: (TILE_H, W*A*4) f32.  out[h, c] = xbase[c] + (h*stride)*ymask[c]."""
    tile_h = bbox_ref.shape[0]
    row = (lax.broadcasted_iota(jnp.int32, (tile_h, 1), 0)
           + pl.program_id(0) * tile_h)                       # global grid row
    sy = row.astype(jnp.float32) * jnp.float32(stride)        # (TILE_H, 1)
    bbox_ref[...] = xbase_ref[...] + sy * ymask_ref[...]


def _fused_kernel(img_ref, xbase_ref, ymask_ref, viscol_ref, bbox_ref, vis_ref,
                  *, stride, straddle, n_img):
    """Fused anchor grid + per-image visibility.

    img_ref:    (2*n_img,) f32 in SMEM  [w0, h0, w1, h1, ...]
    xbase_ref:  (1, W*A*4) f32   base anchors with x-shift baked in (y=0 row)
    ymask_ref:  (1, W*A*4) f32   1.0 on y coords (c%4 in {1,3}), else 0.0
    viscol_ref: (4, W*A)  f32    rows: x1(+shift), x2(+shift), y1_base, y2_base
    bbox_ref:   (TILE_H, W*A*4) f32
    vis_ref:    (n_img, TILE_H, W*A) int8
    """
    tile_h = bbox_ref.shape[0]
    row = (lax.broadcasted_iota(jnp.int32, (tile_h, 1), 0)
           + pl.program_id(0) * tile_h)
    sy = row.astype(jnp.float32) * jnp.float32(stride)        # (TILE_H, 1)

    # Dense anchor grid: one fma per output element, no div/mod anywhere.
    bbox_ref[...] = xbase_ref[...] + sy * ymask_ref[...]

    vc = viscol_ref[...]                                      # (4, W*A)
    x1 = vc[0:1, :]                                           # (1, W*A)
    x2 = vc[1:2, :]
    y1 = vc[2:3, :] + sy                                      # (TILE_H, W*A)
    y2 = vc[3:4, :] + sy

    neg_s = jnp.float32(-straddle)
    x1_ok = x1 >= neg_s                                       # (1, W*A)      image-indep
    y1_ok = y1 >= neg_s                                       # (TILE_H, W*A) image-indep

    for n in range(n_img):                                    # n_img static & small
        # Hoist the image-size + straddle scalar adds out of the compares.
        im_w = img_ref[2 * n] + jnp.float32(straddle)
        im_h = img_ref[2 * n + 1] + jnp.float32(straddle)
        col_ok = x1_ok & (x2 < im_w)                          # (1, W*A)  cheap per image
        # Full-tile body: one compare + two ANDs + int8 cast.
        vis = y1_ok & (y2 < im_h) & col_ok                    # (TILE_H, W*A)
        vis_ref[n, :, :] = vis.astype(jnp.int8)


# ----------------------------------------------------------------------------
# Hardware-generation config, tiling, and VMEM budgeting
# ----------------------------------------------------------------------------
def _round_up(x, m):
    return ((x + m - 1) // m) * m


def _tpu_generation_config():
    """Returns (tile_target_bytes, vmem_limit_cap_bytes, min_row_splits).

    v5e/v6e: 128 MiB VMEM, 1 TC/chip  -> larger tiles, generous limit, 2-way split.
    v7x:      64 MiB VMEM, 2 TCs/chip -> ~4 MiB tiles, tighter limit, 4-way split
                                         so the "parallel" axis feeds both cores.
    """
    vmem_phys = None
    try:
        vmem_phys = int(getattr(pltpu.get_tpu_info(), "vmem_capacity_bytes", 0)) or None
    except Exception:
        vmem_phys = None
    kind = ""
    try:
        kind = str(jax.devices()[0].device_kind).lower()
    except Exception:
        kind = ""
    is_v7 = "v7" in kind

    if vmem_phys is None and not kind:
        # Unknown hardware: settings safe on every generation.
        return (4 << 20), (40 << 20), 2
    if vmem_phys is None:
        vmem_phys = (64 << 20) if is_v7 else (128 << 20)
    if is_v7 or vmem_phys <= (64 << 20):
        return (4 << 20), min(vmem_phys * 3 // 4, 44 << 20), 4
    return (12 << 20), min(vmem_phys * 3 // 4, 96 << 20), 2


def _use_pallas_level(H, W, A):
    # Tiny top levels: sub-128-lane output rows force masked stores and the
    # kernel is pure launch overhead — plain XLA inside the enclosing jit wins.
    return (H >= 64) and (W * A * 4 >= 128) and (H * W * A >= 16384)


def _pick_tile_h(H, W, A, n_img, *, target_bytes, min_splits):
    """Row tile (multiple of 32) sized to ~target_bytes, but forced to give at
    least `min_splits` grid steps so the output writeback DMA pipelines and
    (on v7x) both TensorCores get work.  Requires H >= 64 (Pallas path only)."""
    bytes_per_row = W * A * 4 * 4 + max(n_img, 0) * W * A     # f32 bbox + int8 vis
    cap = (int(target_bytes) // max(bytes_per_row, 1)) // 32 * 32
    cap = max(32, cap)
    forced = _round_up(pl.cdiv(H, max(min_splits, 1)), 32)
    return max(32, min(cap, forced))


def _vmem_budget(tile_h, c4, ca, n_img, cap_bytes):
    """vmem_limit_bytes: double-buffered output tiles + (double-buffered)
    constant inputs + fixed slack, +25% margin, capped generation-aware."""
    out_bytes = 2 * tile_h * c4 * 4 + 2 * n_img * tile_h * ca
    const_bytes = 2 * (2 * c4 * 4 + 4 * ca * 4)
    needed = out_bytes + const_bytes + (1 << 20)
    budget = (needed * 5) // 4
    return int(max(2 << 20, min(int(cap_bytes), budget)))


# ----------------------------------------------------------------------------
# Per-level runners (built once per config, all invoked inside a single jit)
# ----------------------------------------------------------------------------
def _make_bbox_level_runner(xbase, ymask, *, H, W, A, stride, tile_h, vmem_cap):
    c4 = W * A * 4
    grid = (pl.cdiv(H, tile_h),)
    cost = pl.CostEstimate(flops=2 * H * c4, transcendentals=0,
                           bytes_accessed=H * c4 * 4 + 2 * c4 * 4)
    call = pl.pallas_call(
        functools.partial(_bbox_kernel, stride=float(stride)),
        out_shape=jax.ShapeDtypeStruct((H, c4), jnp.float32),
        grid=grid,
        in_specs=[pl.BlockSpec((1, c4), lambda i: (0, 0)),
                  pl.BlockSpec((1, c4), lambda i: (0, 0))],
        out_specs=pl.BlockSpec((tile_h, c4), lambda i: (i, 0)),
        compiler_params=pltpu.CompilerParams(
            dimension_semantics=("parallel",),
            vmem_limit_bytes=_vmem_budget(tile_h, c4, 0, 0, vmem_cap)),
        cost_estimate=cost,
    )

    def run():
        return call(xbase, ymask).reshape(H * W * A, 4)

    return run


def _make_fused_level_runner(xbase, ymask, viscol, *, H, W, A, stride,
                             straddle, n_img, tile_h, vmem_cap):
    c4 = W * A * 4
    ca = W * A
    grid = (pl.cdiv(H, tile_h),)
    cost = pl.CostEstimate(
        flops=2 * H * c4 + 4 * n_img * H * ca,
        transcendentals=0,
        bytes_accessed=H * c4 * 4 + n_img * H * ca + (2 * c4 + 4 * ca) * 4 + 8 * n_img)
    call = pl.pallas_call(
        functools.partial(_fused_kernel, stride=float(stride),
                          straddle=float(straddle), n_img=n_img),
        out_shape=(jax.ShapeDtypeStruct((H, c4), jnp.float32),
                   jax.ShapeDtypeStruct((n_img, H, ca), jnp.int8)),
        grid=grid,
        in_specs=[pl.BlockSpec(memory_space=pltpu.MemorySpace.SMEM),
                  pl.BlockSpec((1, c4), lambda i: (0, 0)),
                  pl.BlockSpec((1, c4), lambda i: (0, 0)),
                  pl.BlockSpec((4, ca), lambda i: (0, 0))],
        out_specs=(pl.BlockSpec((tile_h, c4), lambda i: (i, 0)),
                   pl.BlockSpec((n_img, tile_h, ca), lambda i: (0, i, 0))),
        compiler_params=pltpu.CompilerParams(
            dimension_semantics=("parallel",),
            vmem_limit_bytes=_vmem_budget(tile_h, c4, ca, n_img, vmem_cap)),
        cost_estimate=cost,
    )

    def run(img_flat):
        bbox, vis = call(img_flat, xbase, ymask, viscol)
        return bbox.reshape(H * W * A, 4), vis.reshape(n_img, H * W * A)

    return run


def _with_all_visible(bbox_runner, n_img, n_anchors):
    # straddle_thresh < 0: torch reference marks every anchor visible.
    def run(img_flat):
        del img_flat
        return bbox_runner(), jnp.ones((n_img, n_anchors), dtype=jnp.int8)
    return run


def _jnp_grid_anchors(base, H, W, stride):
    shift_x = jnp.arange(W, dtype=jnp.float32) * jnp.float32(stride)
    shift_y = jnp.arange(H, dtype=jnp.float32) * jnp.float32(stride)
    sy, sx = jnp.meshgrid(shift_y, shift_x, indexing="ij")
    sx = sx.reshape(-1)
    sy = sy.reshape(-1)
    shifts = jnp.stack((sx, sy, sx, sy), axis=1)               # (H*W, 4)
    return (shifts[:, None, :] + base[None, :, :]).reshape(-1, 4)


def _jnp_visibility(anchors, img_flat, straddle, n_img):
    wh = img_flat.reshape(n_img, 2)                            # [w, h] per image
    s = jnp.float32(straddle)
    base_ok = (anchors[:, 0] >= -s) & (anchors[:, 1] >= -s)    # (HWA,)
    vis = (base_ok[None, :]
           & (anchors[None, :, 2] < wh[:, 0:1] + s)
           & (anchors[None, :, 3] < wh[:, 1:2] + s))
    return vis.astype(jnp.int8)


def _make_jnp_level_runner(base, *, H, W, A, stride, straddle, n_img, compute_vis):
    n_anchors = H * W * A

    def run(img_flat):
        anchors = _jnp_grid_anchors(base, H, W, stride)
        if compute_vis:
            vis = _jnp_visibility(anchors, img_flat, straddle, n_img)
        else:
            vis = jnp.ones((n_img, n_anchors), dtype=jnp.int8)
        return anchors, vis

    return run


# ----------------------------------------------------------------------------
# AnchorGenerator
# ----------------------------------------------------------------------------
class AnchorGenerator:
    """JAX/Pallas port of the torch AnchorGenerator."""

    def __init__(self, sizes=(128, 256, 512), aspect_ratios=(0.5, 1.0, 2.0),
                 anchor_strides=(8, 16, 32), straddle_thresh=0):
        if len(anchor_strides) == 1:
            stride = anchor_strides[0]
            cell_anchors = [generate_anchors(stride, sizes, aspect_ratios)]
        else:
            if len(anchor_strides) != len(sizes):
                raise RuntimeError("FPN should have #anchor_strides == #sizes")
            cell_anchors = [
                generate_anchors(stride,
                                 size if isinstance(size, (tuple, list)) else (size,),
                                 aspect_ratios)
                for stride, size in zip(anchor_strides, sizes)
            ]
        self.strides = anchor_strides
        self.cell_anchors = cell_anchors          # plain numpy buffers
        self.straddle_thresh = straddle_thresh
        self._const_cache = {}
        self._fwd_cache = {}
        self._anchors_cache = {}
        self._cfg = _tpu_generation_config()      # (tile_target, vmem_cap, min_splits)

    def num_anchors_per_location(self):
        return [c.shape[0] for c in self.cell_anchors]

    # -- per-level constant rows (tiny, host-side, cached) --------------------
    def _level_constants(self, lvl, H, W):
        key = (lvl, H, W)
        cached = self._const_cache.get(key)
        if cached is not None:
            return cached
        base = self.cell_anchors[lvl]                      # (A, 4) f32
        stride = float(self.strides[lvl])
        A = base.shape[0]
        shift_x = np.arange(W, dtype=np.float32) * stride  # (W,)
        xmask4 = np.array([1.0, 0.0, 1.0, 0.0], np.float32)
        ymask4 = np.array([0.0, 1.0, 0.0, 1.0], np.float32)
        # column order of an output row: (w, a, c) -> w*A*4 + a*4 + c
        xbase = (base[None, :, :]
                 + shift_x[:, None, None] * xmask4[None, None, :]
                 ).reshape(1, W * A * 4).astype(np.float32)
        ymask = np.tile(ymask4, W * A).reshape(1, W * A * 4).astype(np.float32)
        # visibility columns: (w, a) -> w*A + a
        x1 = (base[None, :, 0] + shift_x[:, None]).reshape(-1)
        x2 = (base[None, :, 2] + shift_x[:, None]).reshape(-1)
        y1 = np.broadcast_to(base[:, 1], (W, A)).reshape(-1)
        y2 = np.broadcast_to(base[:, 3], (W, A)).reshape(-1)
        viscol = np.stack([x1, x2, y1, y2], axis=0).astype(np.float32)  # (4, W*A)
        out = (jnp.asarray(xbase), jnp.asarray(ymask), jnp.asarray(viscol))
        self._const_cache[key] = out
        return out

    # -- grid_anchors API parity (bbox only) -----------------------------------
    def _build_grid_anchors_fn(self, grid_sizes):
        tile_target, vmem_cap, min_splits = self._cfg
        runners = []
        for lvl, (H, W) in enumerate(grid_sizes):
            base_np = self.cell_anchors[lvl]
            A = base_np.shape[0]
            stride = float(self.strides[lvl])
            if _use_pallas_level(H, W, A):
                xbase, ymask, _ = self._level_constants(lvl, H, W)
                tile_h = _pick_tile_h(H, W, A, 0, target_bytes=tile_target,
                                      min_splits=min_splits)
                runners.append(_make_bbox_level_runner(
                    xbase, ymask, H=H, W=W, A=A, stride=stride,
                    tile_h=tile_h, vmem_cap=vmem_cap))
            else:
                runners.append(functools.partial(
                    _jnp_grid_anchors, jnp.asarray(base_np), H, W, stride))
        return jax.jit(lambda: [r() for r in runners])

    def grid_anchors(self, grid_sizes):
        key = tuple(tuple(int(s) for s in gs) for gs in grid_sizes)
        fn = self._anchors_cache.get(key)
        if fn is None:
            fn = self._build_grid_anchors_fn(key)
            self._anchors_cache[key] = fn
        return fn()

    # -- forward: one cached jitted program per (grid_sizes, n_img) ------------
    def _build_forward_fn(self, grid_sizes, n_img):
        tile_target, vmem_cap, min_splits = self._cfg
        straddle = float(self.straddle_thresh)
        has_vis = self.straddle_thresh >= 0

        runners = []
        for lvl, (H, W) in enumerate(grid_sizes):
            base_np = self.cell_anchors[lvl]
            A = base_np.shape[0]
            stride = float(self.strides[lvl])
            if _use_pallas_level(H, W, A):
                tile_h = _pick_tile_h(H, W, A, n_img if has_vis else 0,
                                      target_bytes=tile_target,
                                      min_splits=min_splits)
                if has_vis:
                    xbase, ymask, viscol = self._level_constants(lvl, H, W)
                    runners.append(_make_fused_level_runner(
                        xbase, ymask, viscol, H=H, W=W, A=A, stride=stride,
                        straddle=straddle, n_img=n_img, tile_h=tile_h,
                        vmem_cap=vmem_cap))
                else:
                    xbase, ymask, _ = self._level_constants(lvl, H, W)
                    bbox_run = _make_bbox_level_runner(
                        xbase, ymask, H=H, W=W, A=A, stride=stride,
                        tile_h=tile_h, vmem_cap=vmem_cap)
                    runners.append(_with_all_visible(bbox_run, n_img, H * W * A))
            else:
                runners.append(_make_jnp_level_runner(
                    jnp.asarray(base_np), H=H, W=W, A=A, stride=stride,
                    straddle=straddle, n_img=n_img, compute_vis=has_vis))

        def forward_fn(img_flat):
            return [run(img_flat) for run in runners]

        return jax.jit(forward_fn)

    def _get_forward_fn(self, grid_sizes, n_img):
        key = (grid_sizes, n_img, float(self.straddle_thresh))
        fn = self._fwd_cache.get(key)
        if fn is None:
            fn = self._build_forward_fn(grid_sizes, n_img)
            self._fwd_cache[key] = fn
        return fn

    def forward(self, image_sizes, feature_maps):
        """image_sizes: list of (image_height, image_width); feature_maps: NCHW."""
        grid_sizes = tuple(tuple(int(s) for s in fm.shape[-2:]) for fm in feature_maps)
        n_img = len(image_sizes)
        # (w0, h0, w1, h1, ...) — tiny SMEM table shared by all Pallas levels.
        img_flat = jnp.asarray(
            np.array([[w, h] for (h, w) in image_sizes], np.float32).reshape(-1))

        per_level = self._get_forward_fn(grid_sizes, n_img)(img_flat)

        results = []
        for n, (image_height, image_width) in enumerate(image_sizes):
            per_image = []
            for lvl in range(len(grid_sizes)):
                bbox, vis = per_level[lvl]
                per_image.append({
                    "bbox": bbox,
                    "size": (image_width, image_height),
                    "mode": "xyxy",
                    "visibility": vis[n],
                })
            results.append(per_image)
        return results

    __call__ = forward


# ----------------------------------------------------------------------------
# Pure-numpy reference (mirrors the torch forward) for the correctness check.
# ----------------------------------------------------------------------------
def _ref_grid_anchors(base, H, W, stride):
    shift_x = np.arange(0, W * stride, stride, dtype=np.float32)
    shift_y = np.arange(0, H * stride, stride, dtype=np.float32)
    sy, sx = np.meshgrid(shift_y, shift_x, indexing="ij")
    sx = sx.reshape(-1)
    sy = sy.reshape(-1)
    shifts = np.stack((sx, sy, sx, sy), axis=1)
    return (shifts[:, None, :] + base[None, :, :]).reshape(-1, 4)


def _ref_visibility(anchors, image_w, image_h, straddle):
    return ((anchors[..., 0] >= -straddle) & (anchors[..., 1] >= -straddle)
            & (anchors[..., 2] < image_w + straddle)
            & (anchors[..., 3] < image_h + straddle)).astype(np.int32)


if __name__ == "__main__":
    key = jax.random.PRNGKey(0)
    k1, k2, k3 = jax.random.split(key, 3)

    # Small FPN-style setup: 3 levels.
    sizes = (32, 64, 128)
    aspect_ratios = (0.5, 1.0, 2.0)
    strides = (8, 16, 32)
    gen = AnchorGenerator(sizes=sizes, aspect_ratios=aspect_ratios,
                          anchor_strides=strides, straddle_thresh=0)

    # Feature maps are NCHW; only H, W are used by the forward pass.
    # Level 0 (80x80, 19200 anchors) takes the Pallas path, including a partial
    # last row-tile (H % tile_h != 0) with n_img > 1; levels 1-2 take the fused
    # plain-jnp path inside the same jitted program.
    feature_maps = [
        jax.random.normal(k1, (2, 4, 80, 80), dtype=jnp.float32),
        jax.random.normal(k2, (2, 4, 40, 40), dtype=jnp.float32),
        jax.random.normal(k3, (2, 4, 20, 20), dtype=jnp.float32),
    ]
    image_sizes = [(640, 640), (608, 512)]   # (height, width) per image

    out = gen(image_sizes, feature_maps)
    out = jax.block_until_ready(out)

    # Verify against the numpy reference.
    ok = True
    for img_idx, (ih, iw) in enumerate(image_sizes):
        for lvl, fm in enumerate(feature_maps):
            gh, gw = fm.shape[-2:]
            base = gen.cell_anchors[lvl]
            ref_anch = _ref_grid_anchors(base, gh, gw, strides[lvl])
            ref_vis = _ref_visibility(ref_anch, iw, ih, 0)
            got = out[img_idx][lvl]
            ok &= np.allclose(np.asarray(got["bbox"]), ref_anch, atol=1e-4)
            ok &= np.array_equal(
                np.asarray(got["visibility"]).astype(np.int32), ref_vis)

    if not ok:
        raise SystemExit("mismatch vs reference")
    print("KERNEL_OK")
</pallas_src>

<mosaic_0001>
module attributes {stable_mosaic.version = 11 : i64} {
  func.func @_fused_kernel(%arg0: i32, %arg1: memref<4xf32, #tpu.memory_space<smem>>, %arg2: memref<1x960xf32, #tpu.memory_space<vmem>>, %arg3: memref<1x960xf32, #tpu.memory_space<vmem>>, %arg4: memref<4x240xf32, #tpu.memory_space<vmem>>, %arg5: memref<64x960xf32, #tpu.memory_space<vmem>>, %arg6: memref<2x64x240xi8, #tpu.memory_space<vmem>>) attributes {dimension_semantics = [#tpu.dimension_semantics<parallel>], iteration_bounds = array<i64: 2>, scalar_prefetch = 0 : i64, scratch_operands = 0 : i64, tpu.core_type = #tpu.core_type<tc>, window_params = [{transform_indices = @transform_0, window_bounds = array<i64: 4>}, {pipeline_mode = #tpu.pipeline_mode<synchronous>, transform_indices = @transform_1, window_bounds = array<i64: 1, 960>}, {pipeline_mode = #tpu.pipeline_mode<synchronous>, transform_indices = @transform_2, window_bounds = array<i64: 1, 960>}, {pipeline_mode = #tpu.pipeline_mode<synchronous>, transform_indices = @transform_3, window_bounds = array<i64: 4, 240>}, {transform_indices = @transform_4, window_bounds = array<i64: 64, 960>}, {transform_indices = @transform_5, window_bounds = array<i64: 2, 64, 240>}]} {
    %0 = tpu.iota {dimensions = array<i32: 0>} : vector<64x1xi32>
    %c64_i32 = arith.constant 64 : i32
    %1 = arith.muli %arg0, %c64_i32 : i32
    %2 = vector.broadcast %1 : i32 to vector<64x1xi32>
    %3 = arith.addi %0, %2 : vector<64x1xi32>
    %4 = arith.sitofp %3 : vector<64x1xi32> to vector<64x1xf32>
    %cst = arith.constant 8.000000e+00 : f32
    %5 = vector.broadcast %cst : f32 to vector<64x1xf32>
    %6 = arith.mulf %4, %5 : vector<64x1xf32>
    %c0 = arith.constant 0 : index
    %c0_0 = arith.constant 0 : index
    %7 = vector.load %arg2[%c0, %c0_0] : memref<1x960xf32, #tpu.memory_space<vmem>>, vector<1x960xf32>
    %c0_1 = arith.constant 0 : index
    %c0_2 = arith.constant 0 : index
    %8 = vector.load %arg3[%c0_1, %c0_2] : memref<1x960xf32, #tpu.memory_space<vmem>>, vector<1x960xf32>
    %9 = vector.broadcast %6 : vector<64x1xf32> to vector<64x960xf32>
    %10 = vector.broadcast %8 : vector<1x960xf32> to vector<64x960xf32>
    %11 = arith.mulf %9, %10 : vector<64x960xf32>
    %12 = vector.broadcast %7 : vector<1x960xf32> to vector<64x960xf32>
    %13 = arith.addf %12, %11 : vector<64x960xf32>
    %c0_3 = arith.constant 0 : index
    %c0_4 = arith.constant 0 : index
    %14 = vector.load %arg5[%c0_3, %c0_4] : memref<64x960xf32, #tpu.memory_space<vmem>>, vector<64x960xf32>
    tpu.vector_store %arg5[%c0_3, %c0_4], %13 {strides = array<i32>} : memref<64x960xf32, #tpu.memory_space<vmem>>, vector<64x960xf32>,
    %c0_5 = arith.constant 0 : index
    %c0_6 = arith.constant 0 : index
    %15 = vector.load %arg4[%c0_5, %c0_6] : memref<4x240xf32, #tpu.memory_space<vmem>>, vector<4x240xf32>
    %16 = vector.extract_strided_slice %15 {offsets = [0, 0], sizes = [1, 240], strides = [1, 1]} : vector<4x240xf32> to vector<1x240xf32>
    %17 = vector.extract_strided_slice %15 {offsets = [1, 0], sizes = [1, 240], strides = [1, 1]} : vector<4x240xf32> to vector<1x240xf32>
    %18 = vector.extract_strided_slice %15 {offsets = [2, 0], sizes = [1, 240], strides = [1, 1]} : vector<4x240xf32> to vector<1x240xf32>
    %19 = vector.broadcast %18 : vector<1x240xf32> to vector<64x240xf32>
    %20 = vector.broadcast %6 : vector<64x1xf32> to vector<64x240xf32>
    %21 = arith.addf %19, %20 : vector<64x240xf32>
    %22 = vector.extract_strided_slice %15 {offsets = [3, 0], sizes = [1, 240], strides = [1, 1]} : vector<4x240xf32> to vector<1x240xf32>
    %23 = vector.broadcast %22 : vector<1x240xf32> to vector<64x240xf32>
    %24 = vector.broadcast %6 : vector<64x1xf32> to vector<64x240xf32>
    %25 = arith.addf %23, %24 : vector<64x240xf32>
    %cst_7 = arith.constant -0.000000e+00 : f32
    %26 = vector.broadcast %cst_7 : f32 to vector<1x240xf32>
    %27 = arith.cmpf oge, %16, %26 : vector<1x240xf32>
    %cst_8 = arith.constant -0.000000e+00 : f32
    %28 = vector.broadcast %cst_8 : f32 to vector<64x240xf32>
    %29 = arith.cmpf oge, %21, %28 : vector<64x240xf32>
    %c0_9 = arith.constant 0 : index
    %30 = memref.load %arg1[%c0_9] : memref<4xf32, #tpu.memory_space<smem>>
    %cst_10 = arith.constant 0.000000e+00 : f32
    %31 = arith.addf %30, %cst_10 : f32
    %c1 = arith.constant 1 : index
    %32 = memref.load %arg1[%c1] : memref<4xf32, #tpu.memory_space<smem>>
    %cst_11 = arith.constant 0.000000e+00 : f32
    %33 = arith.addf %32, %cst_11 : f32
    %34 = vector.broadcast %31 : f32 to vector<1x240xf32>
    %35 = arith.cmpf olt, %17, %34 : vector<1x240xf32>
    %36 = arith.andi %27, %35 : vector<1x240xi1>
    %37 = vector.broadcast %33 : f32 to vector<64x240xf32>
    %38 = arith.cmpf olt, %25, %37 : vector<64x240xf32>
    %39 = arith.andi %29, %38 : vector<64x240xi1>
    %40 = vector.broadcast %36 : vector<1x240xi1> to vector<64x240xi1>
    %41 = arith.andi %39, %40 : vector<64x240xi1>
    %42 = arith.extui %41 : vector<64x240xi1> to vector<64x240xi8>
    %c0_12 = arith.constant 0 : index
    %c0_13 = arith.constant 0 : index
    %c0_14 = arith.constant 0 : index
    %43 = vector.load %arg6[%c0_12, %c0_13, %c0_14] : memref<2x64x240xi8, #tpu.memory_space<vmem>>, vector<1x64x240xi8>
    %44 = vector.shape_cast %43 : vector<1x64x240xi8> to vector<64x240xi8>
    %45 = vector.shape_cast %42 : vector<64x240xi8> to vector<1x64x240xi8>
    tpu.vector_store %arg6[%c0_12, %c0_13, %c0_14], %45 {strides = array<i32>} : memref<2x64x240xi8, #tpu.memory_space<vmem>>, vector<1x64x240xi8>,
    %c2 = arith.constant 2 : index
    %46 = memref.load %arg1[%c2] : memref<4xf32, #tpu.memory_space<smem>>
    %cst_15 = arith.constant 0.000000e+00 : f32
    %47 = arith.addf %46, %cst_15 : f32
    %c3 = arith.constant 3 : index
    %48 = memref.load %arg1[%c3] : memref<4xf32, #tpu.memory_space<smem>>
    %cst_16 = arith.constant 0.000000e+00 : f32
    %49 = arith.addf %48, %cst_16 : f32
    %50 = vector.broadcast %47 : f32 to vector<1x240xf32>
    %51 = arith.cmpf olt, %17, %50 : vector<1x240xf32>
    %52 = arith.andi %27, %51 : vector<1x240xi1>
    %53 = vector.broadcast %49 : f32 to vector<64x240xf32>
    %54 = arith.cmpf olt, %25, %53 : vector<64x240xf32>
    %55 = arith.andi %29, %54 : vector<64x240xi1>
    %56 = vector.broadcast %52 : vector<1x240xi1> to vector<64x240xi1>
    %57 = arith.andi %55, %56 : vector<64x240xi1>
    %58 = arith.extui %57 : vector<64x240xi1> to vector<64x240xi8>
    %c1_17 = arith.constant 1 : index
    %c0_18 = arith.constant 0 : index
    %c0_19 = arith.constant 0 : index
    %59 = vector.load %arg6[%c1_17, %c0_18, %c0_19] : memref<2x64x240xi8, #tpu.memory_space<vmem>>, vector<1x64x240xi8>
    %60 = vector.shape_cast %59 : vector<1x64x240xi8> to vector<64x240xi8>
    %61 = vector.shape_cast %58 : vector<64x240xi8> to vector<1x64x240xi8>
    tpu.vector_store %arg6[%c1_17, %c0_18, %c0_19], %61 {strides = array<i32>} : memref<2x64x240xi8, #tpu.memory_space<vmem>>, vector<1x64x240xi8>,
    return
  }
  func.func @transform_0(%arg0: i32) -> i32 {
    %c0_i32 = arith.constant 0 : i32
    %c0_i32_0 = arith.constant 0 : i32
    return %c0_i32 : i32
  }
  func.func @transform_1(%arg0: i32) -> (i32, i32) {
    %c0_i32 = arith.constant 0 : i32
    %c0_i32_0 = arith.constant 0 : i32
    %c0_i32_1 = arith.constant 0 : i32
    return %c0_i32, %c0_i32_0 : i32, i32
  }
  func.func @transform_2(%arg0: i32) -> (i32, i32) {
    %c0_i32 = arith.constant 0 : i32
    %c0_i32_0 = arith.constant 0 : i32
    %c0_i32_1 = arith.constant 0 : i32
    return %c0_i32, %c0_i32_0 : i32, i32
  }
  func.func @transform_3(%arg0: i32) -> (i32, i32) {
    %c0_i32 = arith.constant 0 : i32
    %c0_i32_0 = arith.constant 0 : i32
    %c0_i32_1 = arith.constant 0 : i32
    return %c0_i32, %c0_i32_0 : i32, i32
  }
  func.func @transform_4(%arg0: i32) -> (i32, i32) {
    %c0_i32 = arith.constant 0 : i32
    %c0_i32_0 = arith.constant 0 : i32
    return %arg0, %c0_i32 : i32, i32
  }
  func.func @transform_5(%arg0: i32) -> (i32, i32, i32) {
    %c0_i32 = arith.constant 0 : i32
    %c0_i32_0 = arith.constant 0 : i32
    %c0_i32_1 = arith.constant 0 : i32
    return %c0_i32, %arg0, %c0_i32_0 : i32, i32, i32
  }
}

</mosaic_0001>

<bundles_post_ra>
// kernel: forward_fn.1
= control target key start
LH: loop header
LB: loop body
LE: loop exit
PB: predicated region body
PF: predicated region fallthrough
CT: control target
= control target key end

     0   :  { %11 = vsyncpa [#allocation4], 0  ;;  %s3557_s0 = inlined_call_operand.hbm [shape: f32[4], index: 0, kind: input, shape index: {}]   ;;  %s3558_s1 = inlined_call_operand.hbm [shape: f32[1,960], index: 1, kind: input, shape index: {}]   ;;  %s3559_s2 = inlined_call_operand.hbm [shape: f32[1,960], index: 2, kind: input, shape index: {}]   ;;  %s3560_s3 = inlined_call_operand.hbm [shape: f32[4,240], index: 3, kind: input, shape index: {}]   ;;  %s3561_s4 = inlined_call_operand.vmem [shape: f32[80,960], index: 4, kind: output, shape index: {0}]   ;;  %s3562_s5 = inlined_call_operand.vmem [shape: s8[2,80,240], index: 5, kind: output, shape index: {1}]  }
   0x1   :  { %12 = vsyncpa [#allocation3], 0 }
   0x2   :  { %13 = vsyncpa [#allocation7], 0  ;;  %s2024_s18 = smov 0   ;;  %s2026_s19 = smov 0  }
   0x3   :  { %s2028_s20 = smov 0  }
   0x4 LB: > { %s2037_s21 = sadd.s32 4294967295, %s1923_s20   ;;  %s2039_s22 = sadd.s32 1, %s1923_s20   ;;  %s1923_s20 = sphi %s2028_s20, %s3731_s20   ;;  %s1919_s19 = sphi %s2026_s19, %s3730_s19   ;;  %s1915_s18 = sphi %s2024_s18, %s3729_s18  }
   0x5   : > { %s107_s23 = ssub.s32 %s1923_s20, %s2039_s22  ;;  %s110_s24 = sadd.s32 1, %s1919_s19 }
   0x6   : > { %p108_p0 = scmp.eq.s32.totalorder %s107_s23, 0  ;;  %p120_p1 = scmp.ne.s32.totalorder %s1919_s19, %s1915_s18 }
   0x7   : > { %p121_p2 = scmp.eq.s32.totalorder %s2037_s21, 1  ;;  %p1454_p3 = scmp.ge.s32.totalorder %s1923_s20, 1 }
   0x8   : > { %s2047_s25 = scalar_select %p108_p0, %s1919_s19, %s110_s24  }
   0x9   : > { %p2049_p4 = por %p121_p2, %p120_p1  ;;  %p160_p5 = scmp.lt.s32.totalorder %s1923_s20, 3 }
   0xa   : > { %p1555_p6 = scmp.eq.s32.totalorder %s2037_s21, 0  ;;  %s194_s30 = sshll.u32 %s3559_s2, 4  ;;  %s195_s30 = int_to_ptr.hbm [resolvable:$true] %s194_s30 }
   0xb   : > { %p2054_p7 = pnand %p1454_p3, %p160_p5  ;;  %s1989_s6 = smov [#allocation6]  }
   0xc   : > { %s196_s7 = sshll.u32 %s1989_s6, 4  ;;  %s172_s10 = sshll.u32 %s3557_s0, 4  ;;  %s197_s7 = int_to_ptr.vmem [resolvable:$true] %s196_s7  ;;  %s173_s10 = int_to_ptr.hbm [resolvable:$true] %s172_s10 }
   0xd   : > { %p1542_p8 = pneg %p2054_p7  ;;  %s182_s14 = sshll.u32 %s3558_s1, 4  ;;  %s183_s14 = int_to_ptr.hbm [resolvable:$true] %s182_s14 }
   0xe   : > { %s1990_s15 = smov [#allocation2]   ;;  %s206_s20 = sshll.u32 %s3560_s3, 4  ;;  %s207_s20 = int_to_ptr.hbm [resolvable:$true] %s206_s20 }
   0xf   : > { %p2068_p9 = pnand %p1555_p6, %p1542_p8  ;;  %s1991_s23 = smov [#allocation5]  }
  0x10   : > { %s184_s24 = sshll.u32 %s1991_s23, 4  ;;  %s1992_s28 = smov [#allocation8]   ;;  %s185_s24 = int_to_ptr.vmem [resolvable:$true] %s184_s24 }
  0x11   : > { %1551 = dma.hbm_to_vmem [thread:$0]  (!%p2068_p9), %s195_s30, 128, %s197_s7, [#allocation7]  }
  0x12   : > { %1545 = dma.hbm_to_smem (!%p2068_p9), %s173_s10, 16, %s1990_s15, [#allocation4]  }
  0x13   : > { %1548 = dma.hbm_to_vmem [thread:$0]  (!%p2068_p9), %s183_s14, 128, %s185_s24, [#allocation3]  }
  0x14   : > { %s208_s29 = sshll.u32 %s1992_s28, 4  ;;  %221 = sbr.rel (%p2054_p7) target bundleno = 313 (0x139), region = 36  ;;  %s209_s29 = int_to_ptr.vmem [resolvable:$true] %s208_s29 }
  0x15   : > { %1554 = dma.hbm_to_vmem [thread:$0]  (!%p2068_p9), %s207_s20, 128, %s209_s29, [#allocation7]  }
  0x19   : > { %1902 = dma.done.wait (%p1555_p6), [#allocation4], 16  }
  0x1a   : > { %1904 = vsyncadd (%p1555_p6), [#allocation4], 4294967280 }
  0x1b   : > { %1906 = dma.done.wait (%p1555_p6), [#allocation3], 128  }
  0x1c   : > { %1908 = vsyncadd (%p1555_p6), [#allocation3], 4294967168 }
  0x1d   : > { %1910 = dma.done.wait (%p1555_p6), [#allocation7], 256  }
  0x1e   : > { %1912 = vsyncadd (%p1555_p6), [#allocation7], 4294967040 }
  0x1f   : > { %243 = sfence }
  0x20   : > { %v278_v0 = vlaneseq  ;;  %s1466_s27 = sshll.u32 %s2037_s21, 6  ;;  %v313_v3 = vld [vmem:[#allocation5] sm:$0xff]  ;;  %v314_v4 = vld [vmem:[#allocation6] sm:$0xff]  ;;  %s255_s30 = sand.u32 1, %s1915_s18   ;;  %vm484_vm0 = vcmask 523264  }
  0x21   : > { %v2101_v1 = vstv %s1466_s27  ;;  %v2108_v6 = vperm.slane %v314_v4, 0  ;;  %v2110_v7 = vperm.slane %v313_v3, 0  ;;  %v2112_v8 = vperm.slane %v314_v4, 1  ;;  %s1464_s6 = sshll.u32 %s255_s30, 9  ;;  %s2254_s8 = sld [smem:[#allocation2]] }
  0x22   : > { %v2103_v2 = vshrl.u32 %v278_v0, 7  ;;  %v2115_v11 = vperm.slane %v313_v3, 1  ;;  %v2117_v12 = vperm.slane %v314_v4, 2  ;;  %v2119_v13 = vperm.slane %v314_v4, 3  ;;  %s2168_s7 = scalar_lea.vmem [#allocation9], %s1464_s6   ;;  %s2356_s9 = sld [smem:[#allocation2 + $0x1]] }
  0x23   : > { %v2121_v14 = vperm.slane %v314_v4, 4  ;;  %v2123_v15 = vperm.slane %v314_v4, 5  ;;  %v2125_v16 = vperm.slane %v314_v4, 6  ;;  %v2132_v19 = vperm.slane %v313_v3, 2  ;;  %s2771_s10 = sld [smem:[#allocation2 + $0x2]]  ;;  %s1465_s11 = sshll.u32 %s255_s30, 6 }
  0x24   : > { %v289_v5 = vadd.s32 %v2101_v1, %v2103_v2  ;;  %v280_v9 = vadd.s32 8, %v2103_v2  ;;  %v2134_v20 = vperm.slane %v313_v3, 3  ;;  %v281_v21 = vadd.s32 16, %v2103_v2  ;;  %s1470_s18 = sld [smem:[#allocation2 + $0x3]]  ;;  %s2921_s12 = scalar_lea.vmem [#allocation10], %s1465_s11  }
  0x25   : > { %v2137_v22 = vperm.slane %v313_v3, 4  ;;  %v2139_v23 = vperm.slane %v313_v3, 5  ;;  %v2141_v24 = vperm.slane %v314_v4, 7  ;;  %v2157_v33 = vperm.slane %v313_v3, 6  ;;  %s1482_s13 = sshll.u32 (%p2049_p4), %s2037_s21, 3  ;;  %s1518_s14 = sshll.u32 (%p2049_p4), %s2037_s21, 9 }
  0x26   : > { %v297_v10 = vcvt.s32.f32 %v289_v5  ;;  %v290_v17 = vadd.s32 %v2101_v1, %v280_v9  ;;  %v291_v37 = vadd.s32 %v2101_v1, %v281_v21  ;;  %v2166_v40 = vperm.slane %v313_v3, 7  ;;  %s891_s15 = ssub.s32 (%p2049_p4), 10, %s1482_s13  ;;  %s3300_s20 = scalar_lea.vmem (%p2049_p4), %s3561_s4, %s1518_s14  }
  0x27   : > { %v282_v45 = vadd.s32 24, %v2103_v2  ;;  %v283_v0 = vadd.s32 32, %v2103_v2  ;;  %v284_v5 = vadd.s32 40, %v2103_v2  ;;  %v285_v21 = vadd.s32 48, %v2103_v2  ;;  %p892_p10 = scmp.lt.s32.totalorder (%p2049_p4), %s891_s15, 8 }
  0x28   : > { %v2130_v18 = vmul.f32 8.0, %v297_v10  ;;  %v298_v25 = vcvt.s32.f32 %v290_v17  ;;  %v299_v49 = vcvt.s32.f32 %v291_v37 }
  0x29   : > { %v292_v59 = vadd.s32 %v2101_v1, %v282_v45  ;;  %v295_v37 = vadd.s32 %v2101_v1, %v285_v21  ;;  %v609_v21 = vstv %s2254_s8 }
  0x2a   : > { %v332_v26 = vmul.f32 %v2108_v6, %v2130_v18  ;;  %v333_v27 = vmul.f32 %v2112_v8, %v2130_v18  ;;  %v334_v28 = vmul.f32 %v2117_v12, %v2130_v18  ;;  %v335_v29 = vmul.f32 %v2119_v13, %v2130_v18 }
  0x2b   : > { %v336_v30 = vmul.f32 %v2121_v14, %v2130_v18  ;;  %v337_v31 = vmul.f32 %v2123_v15, %v2130_v18  ;;  %v338_v32 = vmul.f32 %v2125_v16, %v2130_v18  ;;  %v339_v39 = vmul.f32 %v2141_v24, %v2130_v18 }
  0x2c   : > { %v413_v34 = vadd.f32 %v2110_v7, %v332_v26  ;;  %v414_v35 = vadd.f32 %v2115_v11, %v333_v27  ;;  %v415_v36 = vadd.f32 %v2132_v19, %v334_v28  ;;  %v416_v38 = vadd.f32 %v2134_v20, %v335_v29 }
  0x2d   : > { %v417_v41 = vadd.f32 %v2137_v22, %v336_v30  ;;  %v2172_v42 = vmul.f32 8.0, %v298_v25  ;;  %v418_v43 = vadd.f32 %v2139_v23, %v337_v31  ;;  %v419_v44 = vadd.f32 %v2157_v33, %v338_v32 }
  0x2e   : > { %477 = vst [vmem:[%s2168_s7] sm:$0xff] %v413_v34  ;;  %v420_v50 = vadd.f32 %v2166_v40, %v339_v39  ;;  %v2201_v58 = vmul.f32 8.0, %v299_v49  ;;  %v300_v17 = vcvt.s32.f32 %v292_v59  ;;  %v293_v29 = vadd.s32 %v2101_v1, %v283_v0 }
  0x2f   : > { %478 = vst [vmem:[%s2168_s7 + $0x8] sm:$0xff] %v414_v35  ;;  %v340_v46 = vmul.f32 %v2108_v6, %v2172_v42  ;;  %v341_v47 = vmul.f32 %v2112_v8, %v2172_v42  ;;  %v342_v48 = vmul.f32 %v2117_v12, %v2172_v42  ;;  %v343_v51 = vmul.f32 %v2119_v13, %v2172_v42 }
  0x30   : > { %479 = vst [vmem:[%s2168_s7 + $0x10] sm:$0xff] %v415_v36  ;;  %v344_v53 = vmul.f32 %v2121_v14, %v2172_v42  ;;  %v345_v55 = vmul.f32 %v2123_v15, %v2172_v42  ;;  %v346_v57 = vmul.f32 %v2125_v16, %v2172_v42  ;;  %v347_v61 = vmul.f32 %v2141_v24, %v2172_v42 }
  0x31   : > { %480 = vst [vmem:[%s2168_s7 + $0x18] sm:$0xff] %v416_v38  ;;  %v421_v52 = vadd.f32 %v2110_v7, %v340_v46  ;;  %v422_v54 = vadd.f32 %v2115_v11, %v341_v47  ;;  %v423_v56 = vadd.f32 %v2132_v19, %v342_v48  ;;  %v424_v60 = vadd.f32 %v2134_v20, %v343_v51 }
  0x32   : > { %481 = vst [vmem:[%s2168_s7 + $0x20] sm:$0xff] %v417_v41  ;;  %v425_v62 = vadd.f32 %v2137_v22, %v344_v53  ;;  %v348_v63 = vmul.f32 %v2108_v6, %v2201_v58  ;;  %v426_v3 = vadd.f32 %v2139_v23, %v345_v55  ;;  %v349_v4 = vmul.f32 %v2112_v8, %v2201_v58 }
  0x33   : > { %482 = vst [vmem:[%s2168_s7 + $0x28] sm:$0xff] %v418_v43  ;;  %v427_v9 = vadd.f32 %v2157_v33, %v346_v57  ;;  %v350_v10 = vmul.f32 %v2117_v12, %v2201_v58  ;;  %v428_v25 = vadd.f32 %v2166_v40, %v347_v61  ;;  %v351_v26 = vmul.f32 %v2119_v13, %v2201_v58 }
  0x34   : > { %483 = vst [vmem:[%s2168_s7 + $0x30] sm:$0xff] %v419_v44  ;;  %v429_v27 = vadd.f32 %v2110_v7, %v348_v63  ;;  %v352_v28 = vmul.f32 %v2121_v14, %v2201_v58  ;;  %v430_v30 = vadd.f32 %v2115_v11, %v349_v4  ;;  %v353_v31 = vmul.f32 %v2123_v15, %v2201_v58 }
  0x35   : > { %485 = vst.msk [vmem:[%s2168_s7 + $0x38] sm:$0xff] %vm484_vm0, %v420_v50  ;;  %v294_v32 = vadd.s32 %v2101_v1, %v284_v5  ;;  %v431_v34 = vadd.f32 %v2132_v19, %v350_v10  ;;  %v354_v35 = vmul.f32 %v2125_v16, %v2201_v58  ;;  %v2242_v36 = vmul.f32 8.0, %v300_v17 }
  0x36   : > { %486 = vst [vmem:[%s2168_s7 + $0x40] sm:$0xff] %v421_v52  ;;  %v432_v38 = vadd.f32 %v2134_v20, %v351_v26  ;;  %v355_v39 = vmul.f32 %v2141_v24, %v2201_v58  ;;  %v433_v41 = vadd.f32 %v2137_v22, %v352_v28  ;;  %v301_v44 = vcvt.s32.f32 %v293_v29 }
  0x37   : > { %487 = vst [vmem:[%s2168_s7 + $0x48] sm:$0xff] %v422_v54  ;;  %v356_v43 = vmul.f32 %v2108_v6, %v2242_v36  ;;  %v434_v45 = vadd.f32 %v2139_v23, %v353_v31  ;;  %v357_v46 = vmul.f32 %v2112_v8, %v2242_v36  ;;  %v302_v47 = vcvt.s32.f32 %v294_v32 }
  0x38   : > { %488 = vst [vmem:[%s2168_s7 + $0x50] sm:$0xff] %v423_v56  ;;  %v435_v48 = vadd.f32 %v2157_v33, %v354_v35  ;;  %v358_v49 = vmul.f32 %v2117_v12, %v2242_v36  ;;  %v303_v50 = vcvt.s32.f32 %v295_v37  ;;  %v436_v51 = vadd.f32 %v2166_v40, %v355_v39 }
  0x39   : > { %489 = vst [vmem:[%s2168_s7 + $0x58] sm:$0xff] %v424_v60  ;;  %v359_v52 = vmul.f32 %v2119_v13, %v2242_v36  ;;  %v437_v53 = vadd.f32 %v2110_v7, %v356_v43  ;;  %v360_v54 = vmul.f32 %v2121_v14, %v2242_v36  ;;  %v2272_v55 = vmul.f32 8.0, %v301_v44 }
  0x3a   : > { %490 = vst [vmem:[%s2168_s7 + $0x60] sm:$0xff] %v425_v62  ;;  %v286_v56 = vadd.s32 56, %v2103_v2  ;;  %v438_v57 = vadd.f32 %v2115_v11, %v357_v46  ;;  %v361_v59 = vmul.f32 %v2123_v15, %v2242_v36  ;;  %v362_v60 = vmul.f32 %v2125_v16, %v2242_v36 }
  0x3b   : > { %491 = vst [vmem:[%s2168_s7 + $0x68] sm:$0xff] %v426_v3  ;;  %v2281_v61 = vmul.f32 8.0, %v302_v47  ;;  %v439_v62 = vadd.f32 %v2132_v19, %v358_v49  ;;  %v363_v2 = vmul.f32 %v2141_v24, %v2242_v36  ;;  %v364_v63 = vmul.f32 %v2108_v6, %v2272_v55 }
  0x3c   : > { %492 = vst [vmem:[%s2168_s7 + $0x70] sm:$0xff] %v427_v9  ;;  %v2289_v0 = vmul.f32 8.0, %v303_v50  ;;  %v440_v3 = vadd.f32 %v2134_v20, %v359_v52  ;;  %v365_v4 = vmul.f32 %v2112_v8, %v2272_v55  ;;  %v366_v5 = vmul.f32 %v2117_v12, %v2272_v55 }
  0x3d   : > { %493 = vst.msk [vmem:[%s2168_s7 + $0x78] sm:$0xff] %vm484_vm0, %v428_v25  ;;  %v367_v9 = vmul.f32 %v2119_v13, %v2272_v55  ;;  %v441_v10 = vadd.f32 %v2137_v22, %v360_v54  ;;  %v2303_v17 = vadd.s32 %v2101_v1, %v286_v56  ;;  %v442_v25 = vadd.f32 %v2139_v23, %v361_v59 }
  0x3e   : > { %494 = vst [vmem:[%s2168_s7 + $0x80] sm:$0xff] %v429_v27  ;;  %v443_v26 = vadd.f32 %v2157_v33, %v362_v60  ;;  %v368_v27 = vmul.f32 %v2121_v14, %v2272_v55  ;;  %v369_v28 = vmul.f32 %v2123_v15, %v2272_v55  ;;  %v444_v29 = vadd.f32 %v2166_v40, %v363_v2 }
  0x3f   : > { %495 = vst [vmem:[%s2168_s7 + $0x88] sm:$0xff] %v430_v30  ;;  %v445_v1 = vadd.f32 %v2110_v7, %v364_v63  ;;  %v370_v30 = vmul.f32 %v2125_v16, %v2272_v55  ;;  %v371_v31 = vmul.f32 %v2141_v24, %v2272_v55  ;;  %v446_v32 = vadd.f32 %v2115_v11, %v365_v4 }
  0x40   : > { %496 = vst [vmem:[%s2168_s7 + $0x90] sm:$0xff] %v431_v34  ;;  %v447_v34 = vadd.f32 %v2132_v19, %v366_v5  ;;  %v448_v35 = vadd.f32 %v2134_v20, %v367_v9  ;;  %v372_v37 = vmul.f32 %v2108_v6, %v2281_v61  ;;  %v373_v39 = vmul.f32 %v2112_v8, %v2281_v61 }
  0x41   : > { %497 = vst [vmem:[%s2168_s7 + $0x98] sm:$0xff] %v432_v38  ;;  %v2326_v38 = vld [vmem:[#allocation8] sm:$0xff]  ;;  %v375_v43 = vmul.f32 %v2119_v13, %v2281_v61  ;;  %v450_v46 = vadd.f32 %v2139_v23, %v369_v28  ;;  %v376_v47 = vmul.f32 %v2121_v14, %v2281_v61  ;;  %v377_v49 = vmul.f32 %v2123_v15, %v2281_v61 }
  0x42   : > { %498 = vst [vmem:[%s2168_s7 + $0xa0] sm:$0xff] %v433_v41  ;;  %v374_v41 = vmul.f32 %v2117_v12, %v2281_v61  ;;  %v544_v44 = vperm.slane %v2326_v38, 2  ;;  %v378_v50 = vmul.f32 %v2125_v16, %v2281_v61  ;;  %v567_v52 = vperm.slane %v2326_v38, 7 }
  0x43   : > { %499 = vst [vmem:[%s2168_s7 + $0xa8] sm:$0xff] %v434_v45  ;;  %v449_v45 = vadd.f32 %v2137_v22, %v368_v27  ;;  %v452_v54 = vadd.f32 %v2166_v40, %v371_v31  ;;  %v453_v56 = vadd.f32 %v2110_v7, %v372_v37  ;;  %v454_v59 = vadd.f32 %v2115_v11, %v373_v39 }
  0x44   : > { %500 = vst [vmem:[%s2168_s7 + $0xb0] sm:$0xff] %v435_v48  ;;  %v545_v48 = vperm.slane %v2326_v38, 6  ;;  %v455_v60 = vadd.f32 %v2132_v19, %v374_v41  ;;  %v2362_v2 = vperm.slane %v544_v44, 2  ;;  %v457_v63 = vadd.f32 %v2137_v22, %v376_v47 }
  0x45   : > { %501 = vst.msk [vmem:[%s2168_s7 + $0xb8] sm:$0xff] %vm484_vm0, %v436_v51  ;;  %v566_v51 = vperm.slane %v2326_v38, 3  ;;  %v381_v4 = vmul.f32 %v2112_v8, %v2289_v0  ;;  %v458_v9 = vadd.f32 %v2139_v23, %v377_v49  ;;  %v382_v28 = vmul.f32 %v2117_v12, %v2289_v0 }
  0x46   : > { %502 = vst [vmem:[%s2168_s7 + $0xc0] sm:$0xff] %v437_v53  ;;  %v451_v53 = vadd.f32 %v2157_v33, %v370_v30  ;;  %v2370_v5 = vperm.slane %v545_v48, 2  ;;  %v2394_v30 = vmul.f32 %v2123_v15, %v2289_v0  ;;  %v2398_v31 = vmul.f32 %v2125_v16, %v2289_v0 }
  0x47   : > { %503 = vst [vmem:[%s2168_s7 + $0xc8] sm:$0xff] %v438_v57  ;;  %v379_v57 = vmul.f32 %v2141_v24, %v2281_v61  ;;  %vm610_vm1 = vcmp.lt.f32.partialorder %v2326_v38, %v609_v21  ;;  %v2412_v37 = vmul.f32 %v2141_v24, %v2289_v0  ;;  %v304_v21 = vcvt.s32.f32 %v2303_v17 }
  0x48   : > { %504 = vst [vmem:[%s2168_s7 + $0xd0] sm:$0xff] %v439_v62  ;;  %v456_v62 = vadd.f32 %v2134_v20, %v375_v43  ;;  %v2416_v39 = vadd.f32 %v2370_v5, %v2130_v18  ;;  %vm3571_vm2 = vcmp.ge.f32.partialorder %v2326_v38, -0.0  ;;  %v2433_v44 = vadd.f32 %v2362_v2, %v2172_v42 }
  0x49   : > { %505 = vst [vmem:[%s2168_s7 + $0xd8] sm:$0xff] %v440_v3  ;;  %v380_v3 = vmul.f32 %v2108_v6, %v2289_v0  ;;  %v2381_v27 = vadd.f32 %v2166_v40, %v379_v57  ;;  %v2441_v47 = vstv %s2356_s9  ;;  %v2450_v48 = vadd.f32 %v2362_v2, %v2201_v58 }
  0x4a   : > { %506 = vst [vmem:[%s2168_s7 + $0xe0] sm:$0xff] %v441_v10  ;;  %v459_v10 = vadd.f32 %v2157_v33, %v378_v50  ;;  %v2460_v50 = vadd.f32 %v2370_v5, %v2201_v58  ;;  %vm3563_vm4 = vcmp.ge.f32.partialorder %v2416_v39, -0.0  ;;  %vm3565_vm7 = vcmp.ge.f32.partialorder %v2433_v44, -0.0 }
  0x4b   : > { %507 = vst [vmem:[%s2168_s7 + $0xe8] sm:$0xff] %v442_v25  ;;  %v2375_v25 = vperm.slane %v566_v51, 3  ;;  %v2464_v51 = vadd.f32 %v2362_v2, %v2242_v36  ;;  %vm3570_vm14 = vcmp.ge.f32.partialorder %v2450_v48, -0.0 }
  0x4c   : > { %508 = vst [vmem:[%s2168_s7 + $0xf0] sm:$0xff] %v443_v26  ;;  %v2377_v26 = vperm.slane %v567_v52, 3 }
  0x4d   : > { %509 = vst.msk [vmem:[%s2168_s7 + $0xf8] sm:$0xff] %vm484_vm0, %v444_v29  ;;  %v383_v29 = vmul.f32 %v2119_v13, %v2289_v0  ;;  %v2422_v41 = vadd.f32 %v2375_v25, %v2130_v18  ;;  %v2437_v17 = vadd.f32 %v2375_v25, %v2172_v42  ;;  %v2468_v52 = vadd.f32 %v2375_v25, %v2201_v58 }
  0x4e   : > { %510 = vst [vmem:[%s2168_s7 + $0x100] sm:$0xff] %v445_v1  ;;  %v2389_v1 = vmul.f32 %v2121_v14, %v2289_v0  ;;  %v2426_v43 = vadd.f32 %v2377_v26, %v2130_v18  ;;  %v2454_v49 = vadd.f32 %v2377_v26, %v2172_v42  ;;  %v2501_v57 = vadd.f32 %v2377_v26, %v2242_v36 }
  0x4f   : > { %511 = vst [vmem:[%s2168_s7 + $0x108] sm:$0xff] %v446_v32  ;;  %v2402_v32 = vadd.f32 %v2362_v2, %v2130_v18  ;;  %v2446_v18 = vadd.f32 %v2370_v5, %v2172_v42  ;;  %v2474_v42 = vadd.f32 %v2377_v26, %v2201_v58  ;;  %vm617_vm5 = vcmp.lt.f32.partialorder %v2422_v41, %v2441_v47 }
  0x50   : > { %512 = vst [vmem:[%s2168_s7 + $0x110] sm:$0xff] %v447_v34  ;;  %v461_v34 = vadd.f32 %v2110_v7, %v380_v3  ;;  %vm618_vm6 = vcmp.lt.f32.partialorder %v2426_v43, %v2441_v47  ;;  %vm619_vm8 = vcmp.lt.f32.partialorder %v2437_v17, %v2441_v47  ;;  %vm620_vm12 = vcmp.lt.f32.partialorder %v2454_v49, %v2441_v47 }
  0x51   : > { %513 = vst [vmem:[%s2168_s7 + $0x118] sm:$0xff] %v448_v35  ;;  %v2408_v35 = vadd.f32 %v2115_v11, %v381_v4  ;;  %vm3564_vm3 = vcmp.ge.f32.partialorder %v2402_v32, -0.0  ;;  %vm3566_vm10 = vcmp.ge.f32.partialorder %v2446_v18, -0.0  ;;  %vm2508_vm13 = vmand %vm3563_vm4, %vm618_vm6  ;;  %vm622_vm6 = vcmp.lt.f32.partialorder %v2474_v42, %v2441_v47 }
  0x52   : > { %514 = vst [vmem:[%s2168_s7 + $0x120] sm:$0xff] %v449_v45  ;;  %v1993_v45 = vmov 0   ;;  %vm2494_vm9 = vmand %vm3564_vm3, %vm617_vm5  ;;  %vm3569_vm5 = vcmp.ge.f32.partialorder %v2460_v50, -0.0 }
  0x53   : > { %515 = vst [vmem:[%s2168_s7 + $0x128] sm:$0xff] %v450_v46  ;;  %v611_v46 = vsel %vm610_vm1, 1, %v1993_v45  ;;  %vm621_vm1 = vcmp.lt.f32.partialorder %v2468_v52, %v2441_v47  ;;  %vm2531_vm4 = vmand %vm3565_vm7, %vm619_vm8  ;;  %vm624_vm7 = vcmp.lt.f32.partialorder %v2501_v57, %v2441_v47 }
  0x54   : > { %516 = vst [vmem:[%s2168_s7 + $0x130] sm:$0xff] %v451_v53  ;;  %v1468_v53 = vrot.slane %v611_v46, 9  ;;  %vm2547_vm8 = vmand %vm3566_vm10, %vm620_vm12 }
  0x55   : > { %517 = vst.msk [vmem:[%s2168_s7 + $0x138] sm:$0xff] %vm484_vm0, %v452_v54  ;;  %v2483_v54 = vadd.f32 %v2370_v5, %v2242_v36  ;;  %vm2564_vm12 = vmand %vm3570_vm14, %vm621_vm1  ;;  %vm733_vm14 = vcmask 912386  }
  0x56   : > { %518 = vst [vmem:[%s2168_s7 + $0x140] sm:$0xff] %v453_v56  ;;  %v2487_v56 = vadd.f32 %v2375_v25, %v2242_v36  ;;  %vm614_vm11 = vcmp.ne.s32.totalorder %v1468_v53, 0  ;;  %v2521_v36 = vmul.f32 8.0, %v304_v21  ;;  %vm2579_vm10 = vmand %vm3569_vm5, %vm622_vm6 }
  0x57   : > { %519 = vst [vmem:[%s2168_s7 + $0x148] sm:$0xff] %v454_v59  ;;  %vm615_vm15 = vmand %vm3571_vm2, %vm614_vm11  ;;  %vm3567_vm11 = vcmp.ge.f32.partialorder %v2464_v51, -0.0 }
  0x58   : > { %520 = vst [vmem:[%s2168_s7 + $0x150] sm:$0xff] %v455_v60  ;;  %v463_v60 = vadd.f32 %v2132_v19, %v382_v28  ;;  %v649_v3 = vsel %vm615_vm15, 1, %v1993_v45  ;;  %vm623_vm3 = vcmp.lt.f32.partialorder %v2487_v56, %v2441_v47  ;;  %v388_v28 = vmul.f32 %v2108_v6, %v2521_v36 }
  0x59   : > { %521 = vst [vmem:[%s2168_s7 + $0x158] sm:$0xff] %v456_v62  ;;  %v464_v62 = vadd.f32 %v2134_v20, %v383_v29  ;;  %vm3568_vm15 = vcmp.ge.f32.partialorder %v2483_v54, -0.0  ;;  %v389_v6 = vmul.f32 %v2112_v8, %v2521_v36  ;;  %v468_v8 = vadd.f32 %v2166_v40, %v2412_v37  ;;  %vm2599_vm1 = vmand %vm3567_vm11, %vm623_vm3 }
  0x5a   : > { %522 = vst [vmem:[%s2168_s7 + $0x160] sm:$0xff] %v457_v63  ;;  %v392_v37 = vmul.f32 %v2121_v14, %v2521_v36  ;;  %vm2613_vm6 = vmand %vm3568_vm15, %vm624_vm7  ;;  %v393_v14 = vmul.f32 %v2123_v15, %v2521_v36  ;;  %v2723_v29 = vadd.f32 %v2375_v25, %v2272_v55  ;;  %v2781_v53 = vadd.f32 %v2377_v26, %v2521_v36 }
  0x5b   : > { %523 = vst [vmem:[%s2168_s7 + $0x168] sm:$0xff] %v458_v9  ;;  %v650_v9 = vperm.slane %v649_v3, 0 }
  0x5c   : > { %524 = vst [vmem:[%s2168_s7 + $0x170] sm:$0xff] %v459_v10  ;;  %v651_v10 = vperm.slane %v649_v3, 4  ;;  %v473_v58 = vadd.f32 %v2137_v22, %v392_v37  ;;  %v474_v59 = vadd.f32 %v2139_v23, %v393_v14 }
  0x5d   : > { %525 = vst.msk [vmem:[%s2168_s7 + $0x178] sm:$0xff] %vm484_vm0, %v2381_v27  ;;  %v465_v27 = vadd.f32 %v2137_v22, %v2389_v1  ;;  %v466_v1 = vadd.f32 %v2139_v23, %v2394_v30  ;;  %v2583_v21 = vperm.slane %v650_v9, 0  ;;  %v467_v30 = vadd.f32 %v2157_v33, %v2398_v31 }
  0x5e   : > { %526 = vst [vmem:[%s2168_s7 + $0x180] sm:$0xff] %v461_v34  ;;  %v2585_v46 = vperm.slane %v651_v10, 0  ;;  %v391_v31 = vmul.f32 %v2119_v13, %v2521_v36  ;;  %v469_v13 = vadd.f32 %v2110_v7, %v388_v28  ;;  %v470_v7 = vadd.f32 %v2115_v11, %v389_v6 }
  0x5f   : > { %527 = vst [vmem:[%s2168_s7 + $0x188] sm:$0xff] %v2408_v35  ;;  %v390_v35 = vmul.f32 %v2117_v12, %v2521_v36  ;;  %vm3573_vm3 = vcmp.eq.s32.totalorder %v2583_v21, 1  ;;  %v2690_v23 = vadd.f32 %v2362_v2, %v2272_v55  ;;  %v2711_v10 = vadd.f32 %v2370_v5, %v2281_v61 }
  0x60   : > { %528 = vst [vmem:[%s2168_s7 + $0x190] sm:$0xff] %v463_v60  ;;  %vm3572_vm11 = vcmp.eq.s32.totalorder %v2585_v46, 1  ;;  %v394_v60 = vmul.f32 %v2125_v16, %v2521_v36  ;;  %vm2631_vm7 = vmand %vm2494_vm9, %vm3573_vm3  ;;  %v472_v11 = vadd.f32 %v2134_v20, %v391_v31  ;;  %v2719_v28 = vadd.f32 %v2370_v5, %v2289_v0 }
  0x61   : > { %529 = vst [vmem:[%s2168_s7 + $0x198] sm:$0xff] %v464_v62  ;;  %v395_v62 = vmul.f32 %v2141_v24, %v2521_v36  ;;  %vm2641_vm15 = vmand %vm2508_vm13, %vm3572_vm11  ;;  %v471_v16 = vadd.f32 %v2132_v19, %v390_v35  ;;  %v2736_v6 = vadd.f32 %v2362_v2, %v2521_v36  ;;  %v2740_v34 = vadd.f32 %v2370_v5, %v2521_v36 }
  0x62   : > { %530 = vst [vmem:[%s2168_s7 + $0x1a0] sm:$0xff] %v465_v27  ;;  %vm2651_vm9 = vmand %vm2531_vm4, %vm3573_vm3  ;;  %v475_v63 = vadd.f32 %v2157_v33, %v394_v60  ;;  %v2694_v33 = vadd.f32 %v2370_v5, %v2272_v55  ;;  %v2715_v27 = vadd.f32 %v2362_v2, %v2289_v0  ;;  %v2761_v5 = vadd.f32 %v2375_v25, %v2289_v0 }
  0x63   : > { %531 = vst [vmem:[%s2168_s7 + $0x1a8] sm:$0xff] %v466_v1  ;;  %vm2663_vm13 = vmand %vm2547_vm8, %vm3572_vm11  ;;  %v476_v9 = vadd.f32 %v2166_v40, %v395_v62  ;;  %vm732_vm8 = vcmask 1041408   ;;  %v2698_v40 = vadd.f32 %v2362_v2, %v2281_v61  ;;  %v2757_v2 = vadd.f32 %v2377_v26, %v2281_v61 }
  0x64   : > { %532 = vst [vmem:[%s2168_s7 + $0x1b0] sm:$0xff] %v467_v30  ;;  %vm2675_vm4 = vmand %vm2564_vm12, %vm3573_vm3  ;;  %v2744_v30 = vadd.f32 %v2377_v26, %v2272_v55  ;;  %v2765_v55 = vadd.f32 %v2377_v26, %v2289_v0  ;;  %v2769_v35 = vadd.f32 %v2375_v25, %v2521_v36  ;;  %v3617_v31 = vmov 0 }
  0x65   : > { %533 = vst.msk [vmem:[%s2168_s7 + $0x1b8] sm:$0xff] %vm484_vm0, %v468_v8  ;;  %vm2684_vm5 = vmand %vm2579_vm10, %vm3572_vm11  ;;  %v2748_v8 = vadd.f32 %v2375_v25, %v2281_v61 }
  0x66   : > { %534 = vst [vmem:[%s2168_s7 + $0x1c0] sm:$0xff] %v469_v13  ;;  %vm2705_vm10 = vmand %vm2599_vm1, %vm3573_vm3  ;;  %vm631_vm3 = vcmp.lt.f32.partialorder %v2769_v35, %v2441_v47 }
  0x67   : > { %535 = vst [vmem:[%s2168_s7 + $0x1c8] sm:$0xff] %v470_v7  ;;  %vm2730_vm12 = vmand %vm2613_vm6, %vm3572_vm11  ;;  %vm3577_vm11 = vcmp.ge.f32.partialorder %v2715_v27, -0.0  ;;  %v2968_v7 = vstv %s1470_s18 }
  0x68   : > { %536 = vst [vmem:[%s2168_s7 + $0x1d0] sm:$0xff] %v471_v16  ;;  %vm672_vm1 = vmpackc.low %vm2651_vm9, %vm2631_vm7  ;;  %vm3574_vm7 = vcmp.ge.f32.partialorder %v2690_v23, -0.0  ;;  %vm3575_vm9 = vcmp.ge.f32.partialorder %v2694_v33, -0.0 }
  0x69   : > { %537 = vst [vmem:[%s2168_s7 + $0x1d8] sm:$0xff] %v472_v11  ;;  %vm673_vm6 = vmpackc.low %vm2705_vm10, %vm2675_vm4  ;;  %v674_v61 = vsel %vm672_vm1, 16711935, %v1993_v45  ;;  %vm3579_vm4 = vcmp.ge.f32.partialorder %v2698_v40, -0.0  ;;  %vm3578_vm10 = vcmp.ge.f32.partialorder %v2711_v10, -0.0  ;;  %vm625_vm1 = vcmp.lt.f32.partialorder %v2723_v29, %v2441_v47 }
  0x6a   : > { %538 = vst [vmem:[%s2168_s7 + $0x1e0] sm:$0xff] %v473_v58  ;;  %v675_v0 = vsel %vm673_vm6, 16711935, %v1993_v45  ;;  %vm678_vm2 = vmpackc.low %vm2663_vm13, %vm2641_vm15  ;;  %vm626_vm15 = vcmp.lt.f32.partialorder %v2744_v30, %v2441_v47  ;;  %v747_v11 = vstv %s2771_s10 }
  0x6b   : > { %539 = vst [vmem:[%s2168_s7 + $0x1e8] sm:$0xff] %v474_v59  ;;  %v676_v25 = vpack.c.b8 %v675_v0, %v674_v61  ;;  %vm679_vm6 = vmpackc.low %vm2730_vm12, %vm2684_vm5  ;;  %v680_v26 = vsel %vm678_vm2, 16711935, %v1993_v45  ;;  %vm627_vm2 = vcmp.lt.f32.partialorder %v2748_v8, %v2441_v47  ;;  %vm630_vm12 = vcmp.lt.f32.partialorder %v2765_v55, %v2441_v47 }
  0x6c   : > { %540 = vst [vmem:[%s2168_s7 + $0x1f0] sm:$0xff] %v475_v63  ;;  %v681_v36 = vsel %vm679_vm6, 16711935, %v1993_v45  ;;  %vm2808_vm13 = vmor %vm733_vm14, %vm732_vm8  ;;  %vm628_vm6 = vcmp.lt.f32.partialorder %v2757_v2, %v2441_v47  ;;  %vm629_vm8 = vcmp.lt.f32.partialorder %v2761_v5, %v2441_v47 }
  0x6d   : > { %541 = vst.msk [vmem:[%s2168_s7 + $0x1f8] sm:$0xff] %vm484_vm0, %v476_v9  ;;  %v3618_v31 = vsel %vm2808_vm13, 4294967295, %v3617_v31  ;;  %vm3576_vm0 = vcmp.ge.f32.partialorder %v2719_v28, -0.0  ;;  %vm677_vm5 = vnez %v676_v25  ;;  %v682_v37 = vpack.c.b8 %v681_v36, %v680_v26  ;;  %vm2824_vm14 = vmand %vm3574_vm7, %vm625_vm1 }
  0x6e   : > { %v696_v13 = vsel %vm677_vm5, 16843009, %v1993_v45  ;;  %vm2840_vm1 = vmand %vm3575_vm9, %vm626_vm15  ;;  %vm632_vm15 = vcmp.lt.f32.partialorder %v2781_v53, %v2441_v47 }
  0x6f   : > { %vm683_vm7 = vnez %v682_v37  ;;  %v700_v60 = vunpack.c.0.s8 %v696_v13  ;;  %v702_v62 = vunpack.c.1.s8 %v696_v13  ;;  %v704_v3 = vunpack.c.2.s8 %v696_v13  ;;  %vm2849_vm5 = vmand %vm3579_vm4, %vm627_vm2 }
  0x70   : > { %v697_v15 = vsel %vm683_vm7, 16843009, %v1993_v45  ;;  %v706_v16 = vunpack.c.3.s8 %v696_v13  ;;  %vm2861_vm9 = vmand %vm3578_vm10, %vm628_vm6  ;;  %vm3631_vm6 = vcmp.ge.f32.partialorder %v2736_v6, -0.0 }
  0x71   : > { %v701_v58 = vunpack.c.0.s8 %v697_v15  ;;  %v703_v19 = vunpack.c.1.s8 %v697_v15  ;;  %v705_v59 = vunpack.c.2.s8 %v697_v15  ;;  %v707_v63 = vunpack.c.3.s8 %v697_v15  ;;  %vm2873_vm7 = vmand %vm3577_vm11, %vm629_vm8 }
  0x72   : > { %vm2882_vm2 = vmand %vm3576_vm0, %vm630_vm12  ;;  %vm3634_vm12 = vcmp.ge.f32.partialorder %v2740_v34, -0.0  ;;  %vm748_vm11 = vcmp.lt.f32.partialorder %v2326_v38, %v747_v11 }
  0x73   : > { %v716_v22 = vpack.c.b16 %v701_v58, %v700_v60  ;;  %v718_v4 = vpack.c.b16 %v703_v19, %v702_v62  ;;  %v720_v1 = vpack.c.b16 %v705_v59, %v704_v3  ;;  %v722_v61 = vpack.c.b16 %v707_v63, %v706_v16  ;;  %vm2891_vm8 = vmand %vm3631_vm6, %vm631_vm3 }
  0x74   : > { %vm2900_vm0 = vmand %vm3634_vm12, %vm632_vm15  ;;  %vm3637_vm3 = vcmp.eq.s32.totalorder %v2583_v21, 1  ;;  %vm3640_vm15 = vcmp.eq.s32.totalorder %v2585_v46, 1  ;;  %v749_v12 = vsel %vm748_vm11, 1, %v1993_v45 }
  0x75   : > { %v717_v26 = vpack.c.b8 %v716_v22, %v716_v22  ;;  %v719_v36 = vpack.c.b8 %v718_v4, %v718_v4  ;;  %v721_v37 = vpack.c.b8 %v720_v1, %v720_v1  ;;  %vm2909_vm6 = vmand %vm2824_vm14, %vm3637_vm3  ;;  %v723_v47 = vpack.c.b8 %v722_v61, %v722_v61 }
  0x76   : > { %vm2917_vm12 = vmand %vm2840_vm1, %vm3640_vm15  ;;  %v1471_v3 = vrot.slane %v749_v12, 9 }
  0x77   : > { %735 = vst.msk [vmem:[%s2921_s12] sm:$0xf] %vm2808_vm13, %v717_v26  ;;  %vm3643_vm14 = vmmov %vm3637_vm3 }
  0x78   : > { %vm666_vm3 = vmand %vm2849_vm5, %vm3643_vm14  ;;  %736 = vst.msk [vmem:[%s2921_s12 + $0x4] sm:$0xf] %vm2808_vm13, %v719_v36 }
  0x79   : > { %vm3644_vm1 = vmmov %vm3640_vm15  ;;  %737 = vst.msk [vmem:[%s2921_s12 + $0x8] sm:$0xf] %vm2808_vm13, %v721_v37 }
  0x7a   : > { %vm2938_vm15 = vmand %vm2861_vm9, %vm3644_vm1  ;;  %738 = vst.msk [vmem:[%s2921_s12 + $0xc] sm:$0xf] %vm2808_vm13, %v723_v47 }
  0x7b   : > { %vm3647_vm10 = vmmov %vm3643_vm14 }
  0x7c   : > { %vm668_vm5 = vmand %vm2873_vm7, %vm3647_vm10 }
  0x7d   : > { %vm3648_vm11 = vmmov %vm3644_vm1 }
  0x7e   : > { %vm2956_vm14 = vmand %vm2882_vm2, %vm3648_vm11 }
  0x7f   : > { %vm3651_vm9 = vmmov %vm3647_vm10 }
  0x80   : > { %vm670_vm1 = vmand %vm2891_vm8, %vm3651_vm9  ;;  %vm755_vm9 = vcmp.lt.f32.partialorder %v2422_v41, %v2968_v7 }
  0x81   : > { %vm3652_vm4 = vmmov %vm3648_vm11  ;;  %vm752_vm11 = vcmp.ne.s32.totalorder %v1471_v3, 0 }
  0x82   : > { %vm671_vm10 = vmand %vm2900_vm0, %vm3652_vm4  ;;  %vm756_vm0 = vcmp.lt.f32.partialorder %v2426_v43, %v2968_v7 }
  0x83   : > { %vm684_vm7 = vmpackc.low %vm666_vm3, %vm2909_vm6  ;;  %vm757_vm6 = vcmp.lt.f32.partialorder %v2437_v17, %v2968_v7  ;;  %vm3653_vm3 = vcmp.ge.f32.partialorder %v2326_v38, -0.0 }
  0x84   : > { %vm685_vm2 = vmpackc.low %vm670_vm1, %vm668_vm5  ;;  %v686_v15 = vsel %vm684_vm7, 16711935, %v1993_v45  ;;  %vm759_vm5 = vcmp.lt.f32.partialorder %v2468_v52, %v2968_v7  ;;  %vm3654_vm7 = vcmp.ge.f32.partialorder %v2402_v32, -0.0 }
  0x85   : > { %v687_v16 = vsel %vm685_vm2, 16711935, %v1993_v45  ;;  %vm690_vm8 = vmpackc.low %vm2938_vm15, %vm2917_vm12  ;;  %vm758_vm15 = vcmp.lt.f32.partialorder %v2454_v49, %v2968_v7 }
  0x86   : > { %v688_v21 = vpack.c.b8 %v687_v16, %v686_v15  ;;  %vm691_vm4 = vmpackc.low %vm671_vm10, %vm2956_vm14  ;;  %v692_v46 = vsel %vm690_vm8, 16711935, %v1993_v45  ;;  %vm760_vm14 = vcmp.lt.f32.partialorder %v2474_v42, %v2968_v7  ;;  %vm761_vm10 = vcmp.lt.f32.partialorder %v2487_v56, %v2968_v7 }
  0x87   : > { %v693_v24 = vsel %vm691_vm4, 16711935, %v1993_v45  ;;  %vm753_vm12 = vmand %vm3653_vm3, %vm752_vm11  ;;  %vm762_vm11 = vcmp.lt.f32.partialorder %v2501_v57, %v2968_v7  ;;  %vm3657_vm8 = vcmp.ge.f32.partialorder %v2416_v39, -0.0 }
  0x88   : > { %vm689_vm1 = vnez %v688_v21  ;;  %v694_v41 = vpack.c.b8 %v693_v24, %v692_v46  ;;  %vm3000_vm2 = vmand %vm3654_vm7, %vm755_vm9  ;;  %v787_v38 = vsel %vm753_vm12, 1, %v1993_v45  ;;  %vm3660_vm9 = vcmp.ge.f32.partialorder %v2433_v44, -0.0 }
  0x89   : > { %v698_v11 = vsel %vm689_vm1, 16843009, %v1993_v45  ;;  %vm3010_vm4 = vmand %vm3657_vm8, %vm756_vm0  ;;  %v788_v19 = vperm.slane %v787_v38, 0  ;;  %v789_v59 = vperm.slane %v787_v38, 4  ;;  %vm3663_vm0 = vcmp.ge.f32.partialorder %v2446_v18, -0.0 }
  0x8a   : > { %vm695_vm3 = vnez %v694_v41  ;;  %v708_v32 = vunpack.c.0.s8 %v698_v11  ;;  %v710_v63 = vunpack.c.1.s8 %v698_v11  ;;  %v712_v9 = vunpack.c.2.s8 %v698_v11  ;;  %vm3019_vm12 = vmand %vm3660_vm9, %vm757_vm6 }
  0x8b   : > { %v699_v39 = vsel %vm695_vm3, 16843009, %v1993_v45  ;;  %v714_v22 = vunpack.c.3.s8 %v698_v11  ;;  %vm3029_vm1 = vmand %vm3663_vm0, %vm758_vm15  ;;  %v3033_v1 = vperm.slane %v788_v19, 0  ;;  %v3035_v17 = vperm.slane %v789_v59, 0 }
  0x8c   : > { %v709_v44 = vunpack.c.0.s8 %v699_v39  ;;  %v711_v61 = vunpack.c.1.s8 %v699_v39  ;;  %v713_v0 = vunpack.c.2.s8 %v699_v39  ;;  %v715_v25 = vunpack.c.3.s8 %v699_v39 }
  0x8d   : > { %vm3666_vm6 = vcmp.ge.f32.partialorder %v2450_v48, -0.0  ;;  %vm3669_vm15 = vcmp.ge.f32.partialorder %v2460_v50, -0.0  ;;  %vm792_vm3 = vcmp.eq.s32.totalorder %v3033_v1, 1  ;;  %vm793_vm9 = vcmp.eq.s32.totalorder %v3035_v17, 1 }
  0x8e   : > { %vm3042_vm7 = vmand %vm3666_vm6, %vm759_vm5  ;;  %v724_v48 = vpack.c.b16 %v709_v44, %v708_v32  ;;  %v726_v52 = vpack.c.b16 %v711_v61, %v710_v63  ;;  %v728_v26 = vpack.c.b16 %v713_v0, %v712_v9  ;;  %v730_v36 = vpack.c.b16 %v715_v25, %v714_v22 }
  0x8f   : > { %vm3051_vm8 = vmand %vm3669_vm15, %vm760_vm14  ;;  %vm3672_vm5 = vcmp.ge.f32.partialorder %v2464_v51, -0.0  ;;  %vm3675_vm0 = vcmp.ge.f32.partialorder %v2483_v54, -0.0 }
  0x90   : > { %vm3062_vm14 = vmand %vm3672_vm5, %vm761_vm10  ;;  %v725_v37 = vpack.c.b8 %v724_v48, %v724_v48  ;;  %v727_v13 = vpack.c.b8 %v726_v52, %v726_v52  ;;  %v729_v47 = vpack.c.b8 %v728_v26, %v728_v26  ;;  %v731_v56 = vpack.c.b8 %v730_v36, %v730_v36 }
  0x91   : > { %vm3071_vm6 = vmand %vm3675_vm0, %vm762_vm11 }
  0x92   : > { %vm3079_vm10 = vmand %vm3000_vm2, %vm792_vm3  ;;  %739 = vst.msk [vmem:[%s2921_s12 + $0x10] sm:$0xf] %vm2808_vm13, %v725_v37 }
  0x93   : > { %vm3087_vm11 = vmand %vm3010_vm4, %vm793_vm9  ;;  %740 = vst.msk [vmem:[%s2921_s12 + $0x14] sm:$0xf] %vm2808_vm13, %v727_v13 }
  0x94   : > { %vm796_vm2 = vmand %vm3019_vm12, %vm792_vm3  ;;  %741 = vst.msk [vmem:[%s2921_s12 + $0x18] sm:$0xf] %vm2808_vm13, %v729_v47 }
  0x95   : > { %vm3105_vm15 = vmand %vm3029_vm1, %vm793_vm9  ;;  %742 = vst.msk [vmem:[%s2921_s12 + $0x1c] sm:$0xf] %vm2808_vm13, %v731_v56  ;;  %vm763_vm13 = vcmp.lt.f32.partialorder %v2723_v29, %v2968_v7 }
  0x96   : > { %vm798_vm4 = vmand %vm3042_vm7, %vm792_vm3 }
  0x97   : > { %vm799_vm12 = vmand %vm3051_vm8, %vm793_vm9 }
  0x98   : > { %vm800_vm1 = vmand %vm3062_vm14, %vm792_vm3  ;;  %vm764_vm14 = vcmp.lt.f32.partialorder %v2744_v30, %v2968_v7 }
  0x99   : > { %vm801_vm5 = vmand %vm3071_vm6, %vm793_vm9 }
  0x9a   : > { %vm810_vm7 = vmpackc.low %vm796_vm2, %vm3079_vm10  ;;  %vm765_vm10 = vcmp.lt.f32.partialorder %v2748_v8, %v2968_v7  ;;  %vm766_vm2 = vcmp.lt.f32.partialorder %v2757_v2, %v2968_v7 }
  0x9b   : > { %vm811_vm0 = vmpackc.low %vm800_vm1, %vm798_vm4  ;;  %v812_v60 = vsel %vm810_vm7, 16711935, %v1993_v45  ;;  %vm3684_vm4 = vcmp.ge.f32.partialorder %v2690_v23, -0.0  ;;  %vm768_vm7 = vcmp.lt.f32.partialorder %v2765_v55, %v2968_v7 }
  0x9c   : > { %v813_v12 = vsel %vm811_vm0, 16711935, %v1993_v45  ;;  %vm816_vm8 = vmpackc.low %vm3105_vm15, %vm3087_vm11  ;;  %vm767_vm15 = vcmp.lt.f32.partialorder %v2761_v5, %v2968_v7  ;;  %vm3690_vm0 = vcmp.ge.f32.partialorder %v2698_v40, -0.0 }
  0x9d   : > { %v814_v14 = vpack.c.b8 %v813_v12, %v812_v60  ;;  %vm817_vm6 = vmpackc.low %vm801_vm5, %vm799_vm12  ;;  %v818_v62 = vsel %vm816_vm8, 16711935, %v1993_v45  ;;  %vm3687_vm12 = vcmp.ge.f32.partialorder %v2694_v33, -0.0 }
  0x9e   : > { %v819_v3 = vsel %vm817_vm6, 16711935, %v1993_v45  ;;  %vm3151_vm1 = vmand %vm3684_vm4, %vm763_vm13  ;;  %vm769_vm13 = vcmp.lt.f32.partialorder %v2769_v35, %v2968_v7 }
  0x9f   : > { %vm815_vm11 = vnez %v814_v14  ;;  %v820_v30 = vpack.c.b8 %v819_v3, %v818_v62  ;;  %vm3159_vm5 = vmand %vm3687_vm12, %vm764_vm14  ;;  %vm3693_vm14 = vcmp.ge.f32.partialorder %v2711_v10, -0.0 }
  0xa0   : > { %v834_v15 = vsel %vm815_vm11, 16843009, %v1993_v45  ;;  %vm3170_vm8 = vmand %vm3690_vm0, %vm765_vm10  ;;  %vm770_vm11 = vcmp.lt.f32.partialorder %v2781_v53, %v2968_v7  ;;  %vm3696_vm10 = vcmp.ge.f32.partialorder %v2715_v27, -0.0 }
  0xa1   : > { %vm821_vm6 = vnez %v820_v30  ;;  %v838_v33 = vunpack.c.0.s8 %v834_v15  ;;  %v840_v2 = vunpack.c.1.s8 %v834_v15  ;;  %v842_v5 = vunpack.c.2.s8 %v834_v15  ;;  %vm3176_vm4 = vmand %vm3693_vm14, %vm766_vm2 }
  0xa2   : > { %v835_v21 = vsel %vm821_vm6, 16843009, %v1993_v45  ;;  %v844_v46 = vunpack.c.3.s8 %v834_v15  ;;  %vm3185_vm12 = vmand %vm3696_vm10, %vm767_vm15  ;;  %vm3699_vm2 = vcmp.ge.f32.partialorder %v2719_v28, -0.0  ;;  %vm3702_vm15 = vcmp.ge.f32.partialorder %v2736_v6, -0.0 }
  0xa3   : > { %v839_v24 = vunpack.c.0.s8 %v835_v21  ;;  %v841_v41 = vunpack.c.1.s8 %v835_v21  ;;  %v843_v43 = vunpack.c.2.s8 %v835_v21  ;;  %v845_v10 = vunpack.c.3.s8 %v835_v21  ;;  %vm3194_vm0 = vmand %vm3699_vm2, %vm768_vm7 }
  0xa4   : > { %vm3203_vm6 = vmand %vm3702_vm15, %vm769_vm13  ;;  %vm3705_vm7 = vcmp.ge.f32.partialorder %v2740_v34, -0.0 }
  0xa5   : > { %v854_v53 = vpack.c.b16 %v839_v24, %v838_v33  ;;  %v856_v11 = vpack.c.b16 %v841_v41, %v840_v2  ;;  %v858_v55 = vpack.c.b16 %v843_v43, %v842_v5  ;;  %v860_v28 = vpack.c.b16 %v845_v10, %v844_v46  ;;  %vm3209_vm14 = vmand %vm3705_vm7, %vm770_vm11 }
  0xa6   : > { %vm3217_vm13 = vmand %vm3151_vm1, %vm792_vm3  ;;  %vm3712_vm11 = vnez %v3618_v31 }
  0xa7   : > { %v855_v35 = vpack.c.b8 %v854_v53, %v854_v53  ;;  %v857_v7 = vpack.c.b8 %v856_v11, %v856_v11  ;;  %v859_v19 = vpack.c.b8 %v858_v55, %v858_v55  ;;  %vm3225_vm10 = vmand %vm3159_vm5, %vm793_vm9  ;;  %v861_v59 = vpack.c.b8 %v860_v28, %v860_v28 }
  0xa8   : > { %vm804_vm1 = vmand %vm3170_vm8, %vm792_vm3 }
  0xa9   : > { %1472 = vst.msk [vmem:[%s2921_s12 + $0x20] sm:$0xf] %vm3712_vm11, %v855_v35  ;;  %vm3240_vm2 = vmand %vm3176_vm4, %vm793_vm9 }
  0xaa   : > { %1473 = vst.msk [vmem:[%s2921_s12 + $0x24] sm:$0xf] %vm3712_vm11, %v857_v7  ;;  %vm806_vm5 = vmand %vm3185_vm12, %vm792_vm3 }
  0xab   : > { %1474 = vst.msk [vmem:[%s2921_s12 + $0x28] sm:$0xf] %vm3712_vm11, %v859_v19  ;;  %vm807_vm8 = vmand %vm3194_vm0, %vm793_vm9 }
  0xac   : > { %1475 = vst.msk [vmem:[%s2921_s12 + $0x2c] sm:$0xf] %vm3712_vm11, %v861_v59  ;;  %vm808_vm4 = vmand %vm3203_vm6, %vm792_vm3 }
  0xad   : > { %vm809_vm12 = vmand %vm3209_vm14, %vm793_vm9 }
  0xae   : > { %vm822_vm15 = vmpackc.low %vm804_vm1, %vm3217_vm13 }
  0xaf   : > { %vm823_vm7 = vmpackc.low %vm808_vm4, %vm806_vm5  ;;  %v824_v63 = vsel %vm822_vm15, 16711935, %v1993_v45 }
  0xb0   : > { %v825_v9 = vsel %vm823_vm7, 16711935, %v1993_v45  ;;  %vm828_vm0 = vmpackc.low %vm3240_vm2, %vm3225_vm10 }
  0xb1   : > { %v826_v20 = vpack.c.b8 %v825_v9, %v824_v63  ;;  %vm829_vm3 = vmpackc.low %vm809_vm12, %vm807_vm8  ;;  %v830_v39 = vsel %vm828_vm0, 16711935, %v1993_v45 }
  0xb2   : > { %v831_v22 = vsel %vm829_vm3, 16711935, %v1993_v45 }
  0xb3   : > { %vm827_vm9 = vnez %v826_v20  ;;  %v832_v4 = vpack.c.b8 %v831_v22, %v830_v39 }
  0xb4   : > { %v836_v1 = vsel %vm827_vm9, 16843009, %v1993_v45 }
  0xb5   : > { %vm833_vm6 = vnez %v832_v4  ;;  %v846_v17 = vunpack.c.0.s8 %v836_v1  ;;  %v848_v44 = vunpack.c.1.s8 %v836_v1  ;;  %v850_v61 = vunpack.c.2.s8 %v836_v1 }
  0xb6   : > { %v837_v0 = vsel %vm833_vm6, 16843009, %v1993_v45  ;;  %v852_v25 = vunpack.c.3.s8 %v836_v1 }
  0xb7   : > { %v847_v49 = vunpack.c.0.s8 %v837_v0  ;;  %v849_v18 = vunpack.c.1.s8 %v837_v0  ;;  %v851_v48 = vunpack.c.2.s8 %v837_v0  ;;  %v853_v52 = vunpack.c.3.s8 %v837_v0 }
  0xb9   : > { %v862_v26 = vpack.c.b16 %v847_v49, %v846_v17  ;;  %v864_v36 = vpack.c.b16 %v849_v18, %v848_v44  ;;  %v866_v50 = vpack.c.b16 %v851_v48, %v850_v61  ;;  %v868_v42 = vpack.c.b16 %v853_v52, %v852_v25 }
  0xbb   : > { %v863_v37 = vpack.c.b8 %v862_v26, %v862_v26  ;;  %v865_v13 = vpack.c.b8 %v864_v36, %v864_v36  ;;  %v867_v47 = vpack.c.b8 %v866_v50, %v866_v50  ;;  %v869_v51 = vpack.c.b8 %v868_v42, %v868_v42 }
  0xbc   : > { %889 = sbr.rel (!%p2049_p4) target bundleno = 260 (0x104), region = 56 }
  0xbd   : > { %1476 = vst.msk [vmem:[%s2921_s12 + $0x30] sm:$0xf] %vm3712_vm11, %v863_v37 }
  0xbe   : > { %1477 = vst.msk [vmem:[%s2921_s12 + $0x34] sm:$0xf] %vm3712_vm11, %v865_v13 }
  0xbf   : > { %1478 = vst.msk [vmem:[%s2921_s12 + $0x38] sm:$0xf] %vm3712_vm11, %v867_v47 }
  0xc0   : > { %1479 = vst.msk [vmem:[%s2921_s12 + $0x3c] sm:$0xf] %vm3712_vm11, %v869_v51 }
  0xc1   : > { %s3733_s15 = smov (!%p892_p10, %s891_s15), 8 }
  0xc2   : > { %s1516_s23 = sshll.u32 %s3733_s15, 6 }
  0xc3   : > { %p1488_p11 = scmp.eq.s32.totalorder %s1516_s23, 0 }
  0xc4   : > { %s3306_s24 = sshrl.u32 (!%p1488_p11), %s3733_s15, 2 }
  0xc5   : > { %902 = sbr.rel (%p1488_p11) target bundleno = 260 (0x104), region = 60  ;;  %p1489_p12 = scmp.le.s32.totalorder (!%p1488_p11), %s3306_s24, 0 }
  0xca   : > { %1342 = sbr.rel (%p1489_p12) target bundleno = 240 (0xf0), region = 196  ;;  %s3715_s28 = smov (!%p1489_p12), %s3300_s20 }
  0xcb   : > { %s3716_s29 = smov (!%p1489_p12), %s2168_s7  ;;  %s3315_s27 = smov (!%p1489_p12), 0  }
  0xcc   : > { %s3317_s30 = smov (!%p1489_p12), 0  }
  0xcf LB: >> { %v915_v45 = vld [vmem:[%s1931_s29] sm:$0xff]  ;;  %s979_s6 = sadd.s32 1, %s1935_s27  ;;  %v923_v57 = vld [vmem:[%s1931_s29 + $0x8] sm:$0xff]  ;;  %v931_v62 = vld [vmem:[%s1931_s29 + $0x10] sm:$0xff]  ;;  %s909_s30 = sadd.s32 1, %s1939_s30   ;;  %s1939_s30 = sphi %s3317_s30, %s909_s30   ;;  %s1935_s27 = sphi %s3315_s27, %s3719_s27   ;;  %s1931_s29 = sphi %s3716_s29, %s3718_s29   ;;  %s1927_s28 = sphi %s3715_s28, %s3717_s28  }
  0xd0   : >> { %v917_v31 = vld [vmem:[%s1931_s29 + $0x40] sm:$0xff]  ;;  %916 = vst [vmem:[%s1927_s28] sm:$0xff] %v915_v45  ;;  %p980_p13 = scmp.ge.s32.totalorder %s979_s6, %s3306_s24  ;;  %v925_v60 = vld [vmem:[%s1931_s29 + $0x48] sm:$0xff]  ;;  %v933_v3 = vld [vmem:[%s1931_s29 + $0x50] sm:$0xff]  ;;  %p908_p0 = scmp.ge.s32.totalorder %s909_s30, %s3306_s24 }
  0xd1   : >> { %v919_v56 = vld [vmem:[%s1931_s29 + $0x80] sm:$0xff]  ;;  %918 = vst [vmem:[%s1927_s28 + $0x40] sm:$0xff] %v917_v31  ;;  %v927_v12 = vld [vmem:[%s1931_s29 + $0x88] sm:$0xff]  ;;  %v935_v29 = vld [vmem:[%s1931_s29 + $0x90] sm:$0xff] }
  0xd2   : >> { %v921_v54 = vld [vmem:[%s1931_s29 + $0xc0] sm:$0xff]  ;;  %920 = vst [vmem:[%s1927_s28 + $0x80] sm:$0xff] %v919_v56  ;;  %s3735_s6 = smov (%p980_p13, %s979_s6), 0  ;;  %v929_v14 = vld [vmem:[%s1931_s29 + $0xc8] sm:$0xff]  ;;  %v937_v30 = vld [vmem:[%s1931_s29 + $0xd0] sm:$0xff] }
  0xd3   : >> { %922 = vst [vmem:[%s1927_s28 + $0xc0] sm:$0xff] %v921_v54  ;;  %s1490_s8 = sshll.u32 %s3735_s6, 8  ;;  %v939_v8 = vld [vmem:[%s1931_s29 + $0x18] sm:$0xff]  ;;  %v947_v2 = vld [vmem:[%s1931_s29 + $0x20] sm:$0xff]  ;;  %v955_v46 = vld [vmem:[%s1931_s29 + $0x28] sm:$0xff]  ;;  %s3719_s27 = smov %s3735_s6 }
  0xd4   : >> { %924 = vst [vmem:[%s1927_s28 + $0x8] sm:$0xff] %v923_v57  ;;  %s3349_s9 = scalar_lea.vmem %s2168_s7, %s1490_s8 [#allocation9]   ;;  %s3352_s10 = scalar_lea.vmem %s3300_s20, %s1490_s8   ;;  %v941_v15 = vld [vmem:[%s1931_s29 + $0x58] sm:$0xff]  ;;  %v949_v5 = vld [vmem:[%s1931_s29 + $0x60] sm:$0xff]  ;;  %v957_v40 = vld [vmem:[%s1931_s29 + $0x68] sm:$0xff] }
  0xd5   : >> { %926 = vst [vmem:[%s1927_s28 + $0x48] sm:$0xff] %v925_v60  ;;  %v943_v23 = vld [vmem:[%s1931_s29 + $0x98] sm:$0xff]  ;;  %v951_v16 = vld [vmem:[%s1931_s29 + $0xa0] sm:$0xff]  ;;  %v959_v24 = vld [vmem:[%s1931_s29 + $0xa8] sm:$0xff] }
  0xd6   : >> { %928 = vst [vmem:[%s1927_s28 + $0x88] sm:$0xff] %v927_v12  ;;  %v945_v33 = vld [vmem:[%s1931_s29 + $0xd8] sm:$0xff]  ;;  %v953_v21 = vld [vmem:[%s1931_s29 + $0xe0] sm:$0xff]  ;;  %v961_v41 = vld [vmem:[%s1931_s29 + $0xe8] sm:$0xff] }
  0xd7   : >> { %930 = vst [vmem:[%s1927_s28 + $0xc8] sm:$0xff] %v929_v14  ;;  %v963_v43 = vld [vmem:[%s1931_s29 + $0x30] sm:$0xff]  ;;  %v971_v53 = vld [vmem:[%s1931_s29 + $0x38] sm:$0xff] }
  0xd8   : >> { %932 = vst [vmem:[%s1927_s28 + $0x10] sm:$0xff] %v931_v62  ;;  %v965_v10 = vld [vmem:[%s1931_s29 + $0x70] sm:$0xff]  ;;  %v973_v11 = vld [vmem:[%s1931_s29 + $0x78] sm:$0xff] }
  0xd9   : >> { %934 = vst [vmem:[%s1927_s28 + $0x50] sm:$0xff] %v933_v3  ;;  %v967_v38 = vld [vmem:[%s1931_s29 + $0xb0] sm:$0xff]  ;;  %v975_v55 = vld [vmem:[%s1931_s29 + $0xb8] sm:$0xff] }
  0xda   : >> { %936 = vst [vmem:[%s1927_s28 + $0x90] sm:$0xff] %v935_v29  ;;  %v969_v27 = vld [vmem:[%s1931_s29 + $0xf0] sm:$0xff]  ;;  %v977_v28 = vld [vmem:[%s1931_s29 + $0xf8] sm:$0xff]  ;;  %s3718_s29 = smov %s3349_s9 }
  0xdb   : >> { %938 = vst [vmem:[%s1927_s28 + $0xd0] sm:$0xff] %v937_v30 }
  0xdc   : >> { %940 = vst [vmem:[%s1927_s28 + $0x18] sm:$0xff] %v939_v8 }
  0xdd   : >> { %942 = vst [vmem:[%s1927_s28 + $0x58] sm:$0xff] %v941_v15 }
  0xde   : >> { %944 = vst [vmem:[%s1927_s28 + $0x98] sm:$0xff] %v943_v23 }
  0xdf   : >> { %946 = vst [vmem:[%s1927_s28 + $0xd8] sm:$0xff] %v945_v33 }
  0xe0   : >> { %948 = vst [vmem:[%s1927_s28 + $0x20] sm:$0xff] %v947_v2 }
  0xe1   : >> { %950 = vst [vmem:[%s1927_s28 + $0x60] sm:$0xff] %v949_v5 }
  0xe2   : >> { %952 = vst [vmem:[%s1927_s28 + $0xa0] sm:$0xff] %v951_v16 }
  0xe3   : >> { %954 = vst [vmem:[%s1927_s28 + $0xe0] sm:$0xff] %v953_v21 }
  0xe4   : >> { %956 = vst [vmem:[%s1927_s28 + $0x28] sm:$0xff] %v955_v46 }
  0xe5   : >> { %958 = vst [vmem:[%s1927_s28 + $0x68] sm:$0xff] %v957_v40 }
  0xe6   : >> { %960 = vst [vmem:[%s1927_s28 + $0xa8] sm:$0xff] %v959_v24 }
  0xe7   : >> { %962 = vst [vmem:[%s1927_s28 + $0xe8] sm:$0xff] %v961_v41 }
  0xe8   : >> { %964 = vst [vmem:[%s1927_s28 + $0x30] sm:$0xff] %v963_v43 }
  0xe9   : >> { %966 = vst [vmem:[%s1927_s28 + $0x70] sm:$0xff] %v965_v10 }
  0xea   : >> { %968 = vst [vmem:[%s1927_s28 + $0xb0] sm:$0xff] %v967_v38 }
  0xeb   : >> { %970 = vst [vmem:[%s1927_s28 + $0xf0] sm:$0xff] %v969_v27  ;;  %911 = sbr.rel (!%p908_p0) target bundleno = 207 (0xcf), region = 202 }
  0xec   : >> { %972 = vst [vmem:[%s1927_s28 + $0x38] sm:$0xff] %v971_v53 }
  0xed   : >> { %974 = vst [vmem:[%s1927_s28 + $0x78] sm:$0xff] %v973_v11 }
  0xee   : >> { %976 = vst [vmem:[%s1927_s28 + $0xb8] sm:$0xff] %v975_v55 }
  0xef   : >> { %978 = vst [vmem:[%s1927_s28 + $0xf8] sm:$0xff] %v977_v28  ;;  %s3717_s28 = smov %s3352_s10 }
  0xf0 PF: > { %s3417_s11 = sand.u32 3, %s3733_s15   ;;  %s1519_s18 = sshll.u32 %s3306_s24, 8 }
  0xf1   : > { %s3421_s13 = scalar_lea.vmem %s2168_s7, %s1519_s18 [#allocation9]   ;;  %s3424_s14 = scalar_lea.vmem %s3300_s20, %s1519_s18  }
  0xf2   : > { %p1495_p1 = scmp.le.s32.totalorder %s3417_s11, 0 }
  0xf3   : > { %s3720_s16 = smov (!%p1495_p1), %s3424_s14  ;;  %s3721_s17 = smov (!%p1495_p1), %s3421_s13 }
  0xf4   : > { %1356 = sbr.rel (%p1495_p1) target bundleno = 260 (0x104), region = 207  ;;  %s3433_s23 = smov (!%p1495_p1), 0  }
  0xf5   : > { %s3435_s28 = smov (!%p1495_p1), 0  }
  0xf9 LB: >> { %v1002_v58 = vld [vmem:[%s1947_s17] sm:$0xff]  ;;  %v1004_v6 = vld [vmem:[%s1947_s17 + $0x8] sm:$0xff]  ;;  %v1006_v35 = vld [vmem:[%s1947_s17 + $0x10] sm:$0xff]  ;;  %s1018_s7 = sadd.s32 1, %s1951_s23  ;;  %s996_s28 = sadd.s32 1, %s1955_s28   ;;  %s1955_s28 = sphi %s3435_s28, %s996_s28   ;;  %s1951_s23 = sphi %s3433_s23, %s3723_s23   ;;  %s1947_s17 = sphi %s3721_s17, %s1023_s17   ;;  %s1943_s16 = sphi %s3720_s16, %s3722_s16  }
  0xfa   : >> { %1003 = vst [vmem:[%s1943_s16] sm:$0xff] %v1002_v58  ;;  %v1008_v7 = vld [vmem:[%s1947_s17 + $0x18] sm:$0xff]  ;;  %p1019_p2 = scmp.ge.s32.totalorder %s1018_s7, %s3417_s11  ;;  %v1010_v19 = vld [vmem:[%s1947_s17 + $0x20] sm:$0xff]  ;;  %v1012_v34 = vld [vmem:[%s1947_s17 + $0x28] sm:$0xff]  ;;  %p995_p3 = scmp.ge.s32.totalorder %s996_s28, %s3417_s11 }
  0xfb   : >> { %1005 = vst [vmem:[%s1943_s16 + $0x8] sm:$0xff] %v1004_v6  ;;  %v1014_v59 = vld [vmem:[%s1947_s17 + $0x30] sm:$0xff]  ;;  %v1016_v32 = vld [vmem:[%s1947_s17 + $0x38] sm:$0xff] }
  0xfc   : >> { %1007 = vst [vmem:[%s1943_s16 + $0x10] sm:$0xff] %v1006_v35  ;;  %s3737_s7 = smov (%p1019_p2, %s1018_s7), 0 }
  0xfd   : >> { %1009 = vst [vmem:[%s1943_s16 + $0x18] sm:$0xff] %v1008_v7  ;;  %s1496_s15 = sshll.u32 %s3737_s7, 6  ;;  %s3723_s23 = smov %s3737_s7 }
  0xfe   : >> { %1011 = vst [vmem:[%s1943_s16 + $0x20] sm:$0xff] %v1010_v19  ;;  %s1023_s17 = scalar_lea.vmem %s3421_s13, %s1496_s15 [#allocation9]   ;;  %s1024_s20 = scalar_lea.vmem %s3424_s14, %s1496_s15  }
  0xff   : >> { %1013 = vst [vmem:[%s1943_s16 + $0x28] sm:$0xff] %v1012_v34  ;;  %998 = sbr.rel (!%p995_p3) target bundleno = 249 (0xf9), region = 213 }
 0x100   : >> { %1015 = vst [vmem:[%s1943_s16 + $0x30] sm:$0xff] %v1014_v59 }
 0x101   : >> { %1017 = vst [vmem:[%s1943_s16 + $0x38] sm:$0xff] %v1016_v32  ;;  %s3722_s16 = smov %s1024_s20 }
 0x104 PF: > { %1030 = sbr.rel (!%p2049_p4) target bundleno = 313 (0x139), region = 86  ;;  %s1498_s24 = sshll.u32 (%p2049_p4), %s2037_s21, 3 }
 0x105   : > { %s1523_s29 = sshll.u32 (%p2049_p4), %s2037_s21, 5  ;;  %s1032_s27 = ssub.s32 (%p2049_p4), 10, %s1498_s24 }
 0x106   : > { %s3460_s8 = scalar_lea.vmem (%p2049_p4), %s3562_s5, %s1523_s29   ;;  %p1033_p5 = scmp.lt.s32.totalorder (%p2049_p4), %s1032_s27, 8 }
 0x109   : > { %s3739_s27 = smov (!%p1033_p5, %s1032_s27), 8 }
 0x10a   : > { %s1521_s9 = sshll.u32 %s3739_s27, 3 }
 0x10b   : > { %p1504_p6 = scmp.eq.s32.totalorder %s1521_s9, 0 }
 0x10c   : > { %s3466_s26 = sshrl.u32 (!%p1504_p6), %s3739_s27, 3 }
 0x10d   : > { %1043 = sbr.rel (%p1504_p6) target bundleno = 313 (0x139), region = 90  ;;  %p1505_p4 = scmp.le.s32.totalorder (!%p1504_p6), %s3466_s26, 0 }
 0x112   : > { %1370 = sbr.rel (%p1505_p4) target bundleno = 296 (0x128), region = 218  ;;  %s3724_s21 = smov (!%p1505_p4), %s3460_s8 }
 0x113   : > { %s3725_s10 = smov (!%p1505_p4), %s2921_s12  ;;  %s3475_s11 = smov (!%p1505_p4), 0  }
 0x114   : > { %s3477_s18 = smov (!%p1505_p4), 0  }
 0x117 LB: >> { %v1060_v63 = vld [vmem:[%s1963_s10] sm:$0xf]  ;;  %v1062_v9 = vld [vmem:[%s1963_s10 + $0x4] sm:$0xf]  ;;  %v1064_v20 = vld [vmem:[%s1963_s10 + $0x8] sm:$0xf]  ;;  %s1971_s18 = sphi %s3477_s18, %s1054_s18   ;;  %s1967_s11 = sphi %s3475_s11, %s3728_s11   ;;  %s1963_s10 = sphi %s3725_s10, %s3727_s10   ;;  %s1959_s21 = sphi %s3724_s21, %s3726_s21  }
 0x118   : >> { %1061 = vst [vmem:[%s1959_s21] sm:$0xf] %v1060_v63  ;;  %v1066_v39 = vld [vmem:[%s1963_s10 + $0xc] sm:$0xf]  ;;  %s1092_s13 = sadd.s32 1, %s1967_s11  ;;  %v1068_v22 = vld [vmem:[%s1963_s10 + $0x10] sm:$0xf] }
 0x119   : >> { %1063 = vst [vmem:[%s1959_s21 + $0x4] sm:$0xf] %v1062_v9  ;;  %v1070_v4 = vld [vmem:[%s1963_s10 + $0x14] sm:$0xf]  ;;  %p1093_p7 = scmp.ge.s32.totalorder %s1092_s13, %s3466_s26  ;;  %v1072_v1 = vld [vmem:[%s1963_s10 + $0x18] sm:$0xf] }
 0x11a   : >> { %1065 = vst [vmem:[%s1959_s21 + $0x8] sm:$0xf] %v1064_v20  ;;  %v1074_v17 = vld [vmem:[%s1963_s10 + $0x1c] sm:$0xf]  ;;  %v1076_v44 = vld [vmem:[%s1963_s10 + $0x20] sm:$0xf] }
 0x11b   : >> { %1067 = vst [vmem:[%s1959_s21 + $0xc] sm:$0xf] %v1066_v39  ;;  %v1078_v61 = vld [vmem:[%s1963_s10 + $0x24] sm:$0xf]  ;;  %s3741_s13 = smov (%p1093_p7, %s1092_s13), 0  ;;  %s1054_s18 = sadd.s32 1, %s1971_s18  }
 0x11c   : >> { %1069 = vst [vmem:[%s1959_s21 + $0x10] sm:$0xf] %v1068_v22  ;;  %v1080_v0 = vld [vmem:[%s1963_s10 + $0x28] sm:$0xf]  ;;  %v1082_v25 = vld [vmem:[%s1963_s10 + $0x2c] sm:$0xf]  ;;  %p1053_p8 = scmp.ge.s32.totalorder %s1054_s18, %s3466_s26  ;;  %s3728_s11 = smov %s3741_s13 }
 0x11d   : >> { %1071 = vst [vmem:[%s1959_s21 + $0x14] sm:$0xf] %v1070_v4  ;;  %s1506_s14 = sshll.u32 %s3741_s13, 5  ;;  %v1084_v49 = vld [vmem:[%s1963_s10 + $0x30] sm:$0xf] }
 0x11e   : >> { %1073 = vst [vmem:[%s1959_s21 + $0x18] sm:$0xf] %v1072_v1  ;;  %s1097_s16 = scalar_lea.vmem %s2921_s12, %s1506_s14 [#allocation10]   ;;  %s1098_s17 = scalar_lea.vmem %s3460_s8, %s1506_s14   ;;  %v1086_v18 = vld [vmem:[%s1963_s10 + $0x34] sm:$0xf]  ;;  %v1088_v48 = vld [vmem:[%s1963_s10 + $0x38] sm:$0xf] }
 0x11f   : >> { %1075 = vst [vmem:[%s1959_s21 + $0x1c] sm:$0xf] %v1074_v17  ;;  %v1090_v52 = vld [vmem:[%s1963_s10 + $0x3c] sm:$0xf]  ;;  %s3727_s10 = smov %s1097_s16 }
 0x120   : >> { %1077 = vst [vmem:[%s1959_s21 + $0x28] sm:$0xf] %v1076_v44 }
 0x121   : >> { %1079 = vst [vmem:[%s1959_s21 + $0x2c] sm:$0xf] %v1078_v61 }
 0x122   : >> { %1081 = vst [vmem:[%s1959_s21 + $0x30] sm:$0xf] %v1080_v0 }
 0x123   : >> { %1083 = vst [vmem:[%s1959_s21 + $0x34] sm:$0xf] %v1082_v25  ;;  %1056 = sbr.rel (!%p1053_p8) target bundleno = 279 (0x117), region = 224 }
 0x124   : >> { %1085 = vst [vmem:[%s1959_s21 + $0x38] sm:$0xf] %v1084_v49 }
 0x125   : >> { %1087 = vst [vmem:[%s1959_s21 + $0x3c] sm:$0xf] %v1086_v18 }
 0x126   : >> { %1089 = vst [vmem:[%s1959_s21 + $0x40] sm:$0xf] %v1088_v48 }
 0x127   : >> { %1091 = vst [vmem:[%s1959_s21 + $0x44] sm:$0xf] %v1090_v52  ;;  %s3726_s21 = smov %s1098_s17 }
 0x128 PF: > { %s3535_s23 = sand.u32 7, %s3739_s27   ;;  %s1524_s28 = sshll.u32 %s3466_s26, 5 }
 0x129   : > { %s3539_s7 = scalar_lea.vmem %s2921_s12, %s1524_s28 [#allocation10]   ;;  %s1105_s15 = scalar_lea.vmem %s3460_s8, %s1524_s28  }
 0x12a   : > { %p1511_p9 = scmp.le.s32.totalorder %s3535_s23, 0 }
 0x12b   : > { %s1973_s20 = smov (!%p1511_p9), %s1105_s15   ;;  %s1977_s24 = smov (!%p1511_p9), %s3539_s7  }
 0x12c   : > { %1384 = sbr.rel (%p1511_p9) target bundleno = 313 (0x139), region = 229  ;;  %s1981_s29 = smov (!%p1511_p9), 0  }
 0x12d   : > { %s1985_s30 = smov (!%p1511_p9), 0  }
 0x131 LB: >> { %v1115_v26 = vld [vmem:[%s1979_s24] sm:$0xf]  ;;  %s1119_s12 = sadd.s32 1, %s1983_s29  ;;  %s1109_s30 = sadd.s32 1, %s1987_s30   ;;  %s1987_s30 = sphi %s1985_s30, %s1109_s30   ;;  %s1983_s29 = sphi %s1981_s29, %s1982_s29   ;;  %s1979_s24 = sphi %s1977_s24, %s1124_s24   ;;  %s1975_s20 = sphi %s1973_s20, %s1125_s20  }
 0x132   : >> { %v1117_v36 = vld [vmem:[%s1979_s24 + $0x20] sm:$0xf]  ;;  %1116 = vst [vmem:[%s1975_s20] sm:$0xf] %v1115_v26  ;;  %p1120_p10 = scmp.ge.s32.totalorder %s1119_s12, %s3535_s23  ;;  %p1108_p11 = scmp.ge.s32.totalorder %s1109_s30, %s3535_s23 }
 0x133   : >> { %1118 = vst [vmem:[%s1975_s20 + $0x28] sm:$0xf] %v1117_v36 }
 0x134   : >> { %s3743_s12 = smov (%p1120_p10, %s1119_s12), 0  ;;  %1111 = sbr.rel (!%p1108_p11) target bundleno = 305 (0x131), region = 235 }
 0x135   : >> { %s1512_s27 = sshll.u32 %s3743_s12, 2  ;;  %s1982_s29 = smov %s3743_s12  }
 0x136   : >> { %s1124_s24 = scalar_lea.vmem %s3539_s7, %s1512_s27 [#allocation10]   ;;  %s1125_s20 = scalar_lea.vmem %s1105_s15, %s1512_s27  }
 0x139 PF: > { %p16_p12 = scmp.ge.s32.totalorder %s2039_s22, 4   ;;  %s3729_s18 = smov %s1919_s19 }
 0x13a   : > { %s3730_s19 = smov %s2047_s25  ;;  %s3731_s20 = smov %s2039_s22 }
 0x13b   :  { %18 = sbr.rel (!%p16_p12) target bundleno = 4 (0x4), region = 246 }
 0x140   :  { %1266 = vsyncpa [#allocation3], 1 }
 0x141   :  { %1268 = vsyncpa [#allocation3 + $0x1], 1 }
 0x142   :  { %1269 = vsyncpa [#allocation7], 1 }
 0x143   :  { %1270 = vsyncpa [#allocation4], 1 }
 0x144   :  { %1272 = vsyncpa [#allocation4 + $0x1], 1 }

</bundles_post_ra>
